<compile_context>
chip_gen: v5e
topology: v5e:2x2
jax: 0.10.0
libtpu: 0.0.40
codegen_flags: <defaults>
</compile_context>

<pallas_src>
import functools

import numpy as np

import jax
import jax.numpy as jnp
from jax.experimental import pallas as pl
from jax.experimental.pallas import tpu as pltpu


def _round_up(a: int, b: int) -> int:
    return (a + b - 1) // b * b


def _device_kind() -> str:
    try:
        return jax.devices()[0].device_kind.lower()
    except Exception:
        return ""


def _vmem_capacity_bytes(kind: str) -> int:
    try:
        info = pltpu.get_tpu_info()
        cap = getattr(info, "vmem_capacity_bytes", None)
        if cap:
            return int(cap)
    except Exception:
        pass
    # Fallback: v7x has 64 MiB / TensorCore, older generations 128 MiB.
    return (64 if "v7" in kind else 128) * 1024 * 1024


def _estimate_vmem_bytes(Np, D_in_pad, tile_f, D_out_pad, esz, resident_bufs):
    """Pessimistic VMEM footprint estimate for one pipeline configuration."""
    return (
        resident_bufs * (2 * Np * Np + Np * D_in_pad) * esz   # U, U^T, x (resident)
        + 2 * Np * tile_f * 4                                  # S tile (double-buffered)
        + 2 * D_in_pad * tile_f * esz                          # W_all column tile
        + 2 * tile_f * 4                                       # b_all tile
        + 2 * tile_f * D_out_pad * esz                         # W_f row tile
        + D_out_pad * 4                                        # b_f
        + Np * D_out_pad * 4                                   # output accumulator
        + 8 * Np * tile_f * 4                                  # live f32 intermediates
    )


def _wave_conv_kernel(x_ref, u_ref, ut_ref, s_ref, w_ref, b_ref, wf_ref, bf_ref,
                      out_ref, *, mxu_dtype):
    """One feature-tile of the fused WaveGC spectral chain + fusion matmul.

    Grid axis 0 runs over feature tiles of the concatenated branch outputs.
    The fusion matmul contracts over that axis, so the output block is shared
    across grid steps: first step stores, middle steps accumulate, last step
    folds its accumulate into the bias+ReLU finalize.
    """
    j = pl.program_id(0)
    is_first = j == 0
    is_last = j == pl.num_programs(0) - 1

    def mm(a, b):
        # MXU matmul, f32 accumulation; operands optionally bf16 (all gens are
        # bf16-native; f32 operands cost multiple MXU passes).
        return jnp.dot(a.astype(mxu_dtype), b.astype(mxu_dtype),
                       preferred_element_type=jnp.float32)

    x = x_ref[...]            # [Np, D_in_pad]  (already mxu_dtype)
    u = u_ref[...]            # [Np, Np]
    ut = ut_ref[...]          # [Np, Np]        precomputed U^T (no in-kernel transpose)
    s = s_ref[...]            # [Np, TILE_F]    f32 per-column spectral scales

    # Fused per-branch Linear: columns of H are the concatenated branch outputs.
    h = mm(x, w_ref[...]) + b_ref[...]                    # [Np, TILE_F]
    # Spectral chain (column-independent ops -> already "comb"-ordered).
    h = mm(ut, h)
    h = s * h
    h = jnp.maximum(mm(u, h), 0.0)                        # act = ReLU; dropout = id (eval)
    h = mm(ut, h)
    h = s * h
    comb = mm(u, h)                                       # [Np, TILE_F] slice of comb

    partial = mm(comb, wf_ref[...])                       # [Np, D_out_pad]

    @pl.when(is_first & is_last)
    def _only_step():
        out_ref[...] = jnp.maximum(partial + bf_ref[...], 0.0)

    @pl.when(is_first & jnp.logical_not(is_last))
    def _first_step():
        out_ref[...] = partial                            # no zero-init pass

    @pl.when(jnp.logical_not(is_first) & jnp.logical_not(is_last))
    def _mid_step():
        out_ref[...] = out_ref[...] + partial

    @pl.when(jnp.logical_not(is_first) & is_last)
    def _last_step():
        out_ref[...] = jnp.maximum(out_ref[...] + partial + bf_ref[...], 0.0)


def wave_conv_pallas(x, eigenvector, filter_signals_after, Ws, bs, Wf, bf,
                     *, mxu_dtype=jnp.bfloat16):
    """Wave_Conv forward.

    x:                    [N, dim_h]
    eigenvector:          [N, N]          (batch.eigenvector)
    filter_signals_after: [1, N, T]       (batch.filter_signals_after)
    Ws[t]:                [dim_h, s_t]    (lin[t].weight stored as [in, out])
    bs[t]:                [s_t]
    Wf:                   [dim_h, dim_h]  (fusion.weight stored as [in, out])
    bf:                   [dim_h]

    mxu_dtype: MXU operand dtype (accumulation and elementwise stay f32).
      bf16 halves the eigenbasis VMEM footprint; pass jnp.float32 for exact
      semantics / ill-conditioned eigenbases.
    """
    N, D_in = x.shape
    T = len(Ws)
    assert filter_signals_after.shape == (1, N, T)

    out_sizes = [int(w.shape[1]) for w in Ws]
    D_feat = sum(out_sizes)                 # width of `comb` (== dim_h)
    D_out = int(Wf.shape[1])

    kind = _device_kind()
    is_v5_or_older = any(tag in kind for tag in ("v2", "v3", "v4", "v5"))
    vmem_cap = _vmem_capacity_bytes(kind)
    esz = 2 if mxu_dtype == jnp.bfloat16 else 4

    # ---- Fuse the T per-branch linears into one full-width linear. ---------
    W_all = jnp.concatenate([w.astype(jnp.float32) for w in Ws], axis=1)       # [D_in, D_feat]
    b_all = jnp.concatenate([b.reshape(-1).astype(jnp.float32) for b in bs])   # [D_feat]

    # ---- Per-column spectral scale map S[n, c] = sig_{branch(c)}[n]. -------
    sig_nt = filter_signals_after[0].astype(jnp.float32)                       # [N, T]
    col_to_branch = np.repeat(np.arange(T), out_sizes)                         # static
    S = jnp.take(sig_nt, jnp.asarray(col_to_branch), axis=1)                   # [N, D_feat]

    # ---- Padding / tiling: everything 128-aligned, lane-dense stores. ------
    Np = _round_up(N, 128)                  # M and K of the four big matmuls
    D_in_pad = _round_up(D_in, 128)
    D_out_pad = _round_up(D_out, 128)

    tile_f = 128
    if (not is_v5_or_older) and D_feat >= 256:
        # v6e/v7x 2x256 MXU: a 256-wide tile halves vmatmul count — but only if
        # the (pessimistic, double-buffered-resident) footprint still fits.
        est_256 = _estimate_vmem_bytes(Np, D_in_pad, 256, D_out_pad, esz, 2)
        if est_256 <= int(0.70 * vmem_cap):
            tile_f = 256
    D_feat_pad = _round_up(max(D_feat, tile_f), tile_f)
    n_tiles = D_feat_pad // tile_f

    def pad2(a, r, c):
        return jnp.pad(a, ((0, r - a.shape[0]), (0, c - a.shape[1])))

    U_f32 = pad2(eigenvector.astype(jnp.float32), Np, Np)
    x_p = pad2(x.astype(jnp.float32), Np, D_in_pad).astype(mxu_dtype)
    u_p = U_f32.astype(mxu_dtype)
    ut_p = U_f32.T.astype(mxu_dtype)                 # transposed once, outside the kernel
    s_p = pad2(S, Np, D_feat_pad)
    w_p = pad2(W_all, D_in_pad, D_feat_pad).astype(mxu_dtype)
    b_p = pad2(b_all.reshape(1, -1), 1, D_feat_pad)
    wf_p = pad2(Wf.astype(jnp.float32), D_feat_pad, D_out_pad).astype(mxu_dtype)
    bf_p = pad2(bf.reshape(1, -1).astype(jnp.float32), 1, D_out_pad)

    # ---- VMEM budget clamped to the device's physical capacity. ------------
    est = _estimate_vmem_bytes(Np, D_in_pad, tile_f, D_out_pad, esz, 2)
    hard_cap = max(32 * 1024 * 1024, vmem_cap - 8 * 1024 * 1024)
    vmem_limit = int(min(hard_cap, max(32 * 1024 * 1024, 2 * est)))

    kernel = functools.partial(_wave_conv_kernel, mxu_dtype=mxu_dtype)
    const = lambda j: (0, 0)              # resident blocks: no re-DMA across steps

    def build_call(single_buffer_residents):
        def resident(shape):
            if single_buffer_residents:
                # Grid-invariant inputs: one VMEM buffer instead of the default 2.
                return pl.BlockSpec(shape, const, pipeline_mode=pl.Buffered(1))
            return pl.BlockSpec(shape, const)

        return pl.pallas_call(
            kernel,
            grid=(n_tiles,),
            in_specs=[
                resident((Np, D_in_pad)),                             # x
                resident((Np, Np)),                                   # U
                resident((Np, Np)),                                   # U^T
                pl.BlockSpec((Np, tile_f), lambda j: (0, j)),         # S feature tile
                pl.BlockSpec((D_in_pad, tile_f), lambda j: (0, j)),   # W_all column tile
                pl.BlockSpec((1, tile_f), lambda j: (0, j)),          # b_all tile
                pl.BlockSpec((tile_f, D_out_pad), lambda j: (j, 0)),  # W_f row tile
                resident((1, D_out_pad)),                             # b_f
            ],
            out_specs=pl.BlockSpec((Np, D_out_pad), const),           # accumulated over tiles
            out_shape=jax.ShapeDtypeStruct((Np, D_out_pad), jnp.float32),
            compiler_params=pltpu.CompilerParams(
                dimension_semantics=("arbitrary",),   # fusion matmul reduces over this axis
                vmem_limit_bytes=vmem_limit,
            ),
        )

    args = (x_p, u_p, ut_p, s_p, w_p, b_p, wf_p, bf_p)
    try:
        out_p = jax.block_until_ready(build_call(True)(*args))
    except Exception:
        # Fallback if single-buffered pipeline_mode is rejected by this JAX build.
        out_p = jax.block_until_ready(build_call(False)(*args))

    return out_p[:N, :D_out]


def wave_conv_reference(x, eigenvector, filter_signals_after, Ws, bs, Wf, bf):
    """Plain-JAX reference mirroring the PyTorch forward (eval mode, ReLU)."""
    u = eigenvector
    ut = u.T
    sig_nt = filter_signals_after[0]            # [N, T]
    pieces = []
    for t in range(len(Ws)):
        sig = sig_nt[:, t][:, None]
        h = x @ Ws[t] + bs[t]
        h = ut @ h
        h = sig * h
        h = jax.nn.relu(u @ h)
        h = ut @ h
        h = sig * h
        h = u @ h
        pieces.append(h)
    comb = jnp.concatenate(pieces, axis=-1)
    return jax.nn.relu(comb @ Wf + bf)


if __name__ == "__main__":
    # Small synthetic problem consistent with the module's forward.
    N = 16          # number of nodes (== eigenvector dimension)
    dim_h = 32
    num_J = 3
    t_number = num_J + 1
    single_out = dim_h // t_number                  # 8
    single_out_last = dim_h - num_J * single_out    # 8

    key = jax.random.PRNGKey(0)
    keys = jax.random.split(key, 3 + 2 * t_number + 2)

    x = jax.random.normal(keys[0], (N, dim_h), dtype=jnp.float32)
    eigenvector = jax.random.normal(keys[1], (N, N), dtype=jnp.float32) / jnp.sqrt(N)
    filter_signals_after = jax.random.uniform(keys[2], (1, N, t_number), dtype=jnp.float32)

    # Deterministic synthetic parameters (shapes from __init__); stored as [in, out].
    out_sizes = [single_out] * (t_number - 1) + [single_out_last]
    Ws, bs = [], []
    for t, s in enumerate(out_sizes):
        Ws.append(0.1 * jax.random.normal(keys[3 + 2 * t], (dim_h, s), dtype=jnp.float32))
        bs.append(0.1 * jax.random.normal(keys[4 + 2 * t], (s,), dtype=jnp.float32))
    Wf = 0.1 * jax.random.normal(keys[3 + 2 * t_number], (dim_h, dim_h), dtype=jnp.float32)
    bf = 0.1 * jax.random.normal(keys[4 + 2 * t_number], (dim_h,), dtype=jnp.float32)

    ref = wave_conv_reference(x, eigenvector, filter_signals_after, Ws, bs, Wf, bf)

    # f32 MXU-operand path (exact-semantics check).
    out = wave_conv_pallas(x, eigenvector, filter_signals_after, Ws, bs, Wf, bf,
                           mxu_dtype=jnp.float32)
    out = jax.block_until_ready(out)
    assert out.shape == (N, dim_h)
    assert jnp.allclose(out, ref, atol=2e-3, rtol=2e-3), float(jnp.max(jnp.abs(out - ref)))

    # bf16 MXU-operand path (f32 accumulation / elementwise) — default / fast path.
    out_bf16 = wave_conv_pallas(x, eigenvector, filter_signals_after, Ws, bs, Wf, bf,
                                mxu_dtype=jnp.bfloat16)
    out_bf16 = jax.block_until_ready(out_bf16)
    assert out_bf16.shape == (N, dim_h)
    assert bool(jnp.all(jnp.isfinite(out_bf16)))
    assert float(jnp.max(jnp.abs(out_bf16 - ref))) < 0.25

    print("KERNEL_OK")
</pallas_src>

<mosaic_0001>
module attributes {stable_mosaic.version = 11 : i64} {
  func.func @_wave_conv_kernel(%arg0: i32, %arg1: memref<128x128xf32, #tpu.memory_space<vmem>>, %arg2: memref<128x128xf32, #tpu.memory_space<vmem>>, %arg3: memref<128x128xf32, #tpu.memory_space<vmem>>, %arg4: memref<128x128xf32, #tpu.memory_space<vmem>>, %arg5: memref<128x128xf32, #tpu.memory_space<vmem>>, %arg6: memref<1x128xf32, #tpu.memory_space<vmem>>, %arg7: memref<128x128xf32, #tpu.memory_space<vmem>>, %arg8: memref<1x128xf32, #tpu.memory_space<vmem>>, %arg9: memref<128x128xf32, #tpu.memory_space<vmem>>) attributes {dimension_semantics = [#tpu.dimension_semantics<arbitrary>], iteration_bounds = array<i64: 1>, scalar_prefetch = 0 : i64, scratch_operands = 0 : i64, tpu.core_type = #tpu.core_type<tc>, window_params = [{pipeline_mode = #tpu.pipeline_mode<synchronous>, transform_indices = @transform_0, window_bounds = array<i64: 128, 128>}, {pipeline_mode = #tpu.pipeline_mode<synchronous>, transform_indices = @transform_1, window_bounds = array<i64: 128, 128>}, {pipeline_mode = #tpu.pipeline_mode<synchronous>, transform_indices = @transform_2, window_bounds = array<i64: 128, 128>}, {transform_indices = @transform_3, window_bounds = array<i64: 128, 128>}, {transform_indices = @transform_4, window_bounds = array<i64: 128, 128>}, {transform_indices = @transform_5, window_bounds = array<i64: 1, 128>}, {transform_indices = @transform_6, window_bounds = array<i64: 128, 128>}, {pipeline_mode = #tpu.pipeline_mode<synchronous>, transform_indices = @transform_7, window_bounds = array<i64: 1, 128>}, {pipeline_mode = #tpu.pipeline_mode<synchronous>, transform_indices = @transform_8, window_bounds = array<i64: 128, 128>}]} {
    %c0_i32 = arith.constant 0 : i32
    %0 = arith.cmpi eq, %arg0, %c0_i32 : i32
    %c0_i32_0 = arith.constant 0 : i32
    %1 = arith.cmpi eq, %arg0, %c0_i32_0 : i32
    %c0 = arith.constant 0 : index
    %c0_1 = arith.constant 0 : index
    %2 = vector.load %arg1[%c0, %c0_1] : memref<128x128xf32, #tpu.memory_space<vmem>>, vector<128x128xf32>
    %c0_2 = arith.constant 0 : index
    %c0_3 = arith.constant 0 : index
    %3 = vector.load %arg2[%c0_2, %c0_3] : memref<128x128xf32, #tpu.memory_space<vmem>>, vector<128x128xf32>
    %c0_4 = arith.constant 0 : index
    %c0_5 = arith.constant 0 : index
    %4 = vector.load %arg3[%c0_4, %c0_5] : memref<128x128xf32, #tpu.memory_space<vmem>>, vector<128x128xf32>
    %c0_6 = arith.constant 0 : index
    %c0_7 = arith.constant 0 : index
    %5 = vector.load %arg4[%c0_6, %c0_7] : memref<128x128xf32, #tpu.memory_space<vmem>>, vector<128x128xf32>
    %c0_8 = arith.constant 0 : index
    %c0_9 = arith.constant 0 : index
    %6 = vector.load %arg5[%c0_8, %c0_9] : memref<128x128xf32, #tpu.memory_space<vmem>>, vector<128x128xf32>
    %cst = arith.constant dense<0.000000e+00> : vector<128x128xf32>
    %7 = tpu.matmul %2, %6, %cst {dimension_numbers = #tpu.dot_dimension_numbers<[1], [0], [0], [1], [0, 0, 1, 1], [], []>} : vector<128x128xf32>, vector<128x128xf32>, vector<128x128xf32> -> vector<128x128xf32>
    %c0_10 = arith.constant 0 : index
    %c0_11 = arith.constant 0 : index
    %8 = vector.load %arg6[%c0_10, %c0_11] : memref<1x128xf32, #tpu.memory_space<vmem>>, vector<1x128xf32>
    %9 = vector.broadcast %8 : vector<1x128xf32> to vector<128x128xf32>
    %10 = arith.addf %7, %9 : vector<128x128xf32>
    %cst_12 = arith.constant dense<0.000000e+00> : vector<128x128xf32>
    %11 = tpu.matmul %4, %10, %cst_12 {dimension_numbers = #tpu.dot_dimension_numbers<[1], [0], [0], [1], [0, 0, 1, 1], [], []>} : vector<128x128xf32>, vector<128x128xf32>, vector<128x128xf32> -> vector<128x128xf32>
    %12 = arith.mulf %5, %11 : vector<128x128xf32>
    %cst_13 = arith.constant dense<0.000000e+00> : vector<128x128xf32>
    %13 = tpu.matmul %3, %12, %cst_13 {dimension_numbers = #tpu.dot_dimension_numbers<[1], [0], [0], [1], [0, 0, 1, 1], [], []>} : vector<128x128xf32>, vector<128x128xf32>, vector<128x128xf32> -> vector<128x128xf32>
    %cst_14 = arith.constant 0.000000e+00 : f32
    %14 = vector.broadcast %cst_14 : f32 to vector<128x128xf32>
    %15 = arith.maximumf %13, %14 : vector<128x128xf32>
    %cst_15 = arith.constant dense<0.000000e+00> : vector<128x128xf32>
    %16 = tpu.matmul %4, %15, %cst_15 {dimension_numbers = #tpu.dot_dimension_numbers<[1], [0], [0], [1], [0, 0, 1, 1], [], []>} : vector<128x128xf32>, vector<128x128xf32>, vector<128x128xf32> -> vector<128x128xf32>
    %17 = arith.mulf %5, %16 : vector<128x128xf32>
    %cst_16 = arith.constant dense<0.000000e+00> : vector<128x128xf32>
    %18 = tpu.matmul %3, %17, %cst_16 {dimension_numbers = #tpu.dot_dimension_numbers<[1], [0], [0], [1], [0, 0, 1, 1], [], []>} : vector<128x128xf32>, vector<128x128xf32>, vector<128x128xf32> -> vector<128x128xf32>
    %c0_17 = arith.constant 0 : index
    %c0_18 = arith.constant 0 : index
    %19 = vector.load %arg7[%c0_17, %c0_18] : memref<128x128xf32, #tpu.memory_space<vmem>>, vector<128x128xf32>
    %cst_19 = arith.constant dense<0.000000e+00> : vector<128x128xf32>
    %20 = tpu.matmul %18, %19, %cst_19 {dimension_numbers = #tpu.dot_dimension_numbers<[1], [0], [0], [1], [0, 0, 1, 1], [], []>} : vector<128x128xf32>, vector<128x128xf32>, vector<128x128xf32> -> vector<128x128xf32>
    %21 = arith.andi %0, %1 : i1
    %22 = arith.extui %21 : i1 to i32
    %c0_i32_20 = arith.constant 0 : i32
    %23 = arith.cmpi ne, %22, %c0_i32_20 : i32
    scf.if %23 {
      %c0_27 = arith.constant 0 : index
      %c0_28 = arith.constant 0 : index
      %37 = vector.load %arg8[%c0_27, %c0_28] : memref<1x128xf32, #tpu.memory_space<vmem>>, vector<1x128xf32>
      %38 = vector.broadcast %37 : vector<1x128xf32> to vector<128x128xf32>
      %39 = arith.addf %20, %38 : vector<128x128xf32>
      %cst_29 = arith.constant 0.000000e+00 : f32
      %40 = vector.broadcast %cst_29 : f32 to vector<128x128xf32>
      %41 = arith.maximumf %39, %40 : vector<128x128xf32>
      %c0_30 = arith.constant 0 : index
      %c0_31 = arith.constant 0 : index
      %42 = vector.load %arg9[%c0_30, %c0_31] : memref<128x128xf32, #tpu.memory_space<vmem>>, vector<128x128xf32>
      tpu.vector_store %arg9[%c0_30, %c0_31], %41 {strides = array<i32>} : memref<128x128xf32, #tpu.memory_space<vmem>>, vector<128x128xf32>,
    } else {
    }
    %true = arith.constant true
    %24 = arith.xori %1, %true : i1
    %25 = arith.andi %0, %24 : i1
    %26 = arith.extui %25 : i1 to i32
    %c0_i32_21 = arith.constant 0 : i32
    %27 = arith.cmpi ne, %26, %c0_i32_21 : i32
    scf.if %27 {
      %c0_27 = arith.constant 0 : index
      %c0_28 = arith.constant 0 : index
      %37 = vector.load %arg9[%c0_27, %c0_28] : memref<128x128xf32, #tpu.memory_space<vmem>>, vector<128x128xf32>
      tpu.vector_store %arg9[%c0_27, %c0_28], %20 {strides = array<i32>} : memref<128x128xf32, #tpu.memory_space<vmem>>, vector<128x128xf32>,
    } else {
    }
    %true_22 = arith.constant true
    %28 = arith.xori %0, %true_22 : i1
    %true_23 = arith.constant true
    %29 = arith.xori %1, %true_23 : i1
    %30 = arith.andi %28, %29 : i1
    %31 = arith.extui %30 : i1 to i32
    %c0_i32_24 = arith.constant 0 : i32
    %32 = arith.cmpi ne, %31, %c0_i32_24 : i32
    scf.if %32 {
      %c0_27 = arith.constant 0 : index
      %c0_28 = arith.constant 0 : index
      %37 = vector.load %arg9[%c0_27, %c0_28] : memref<128x128xf32, #tpu.memory_space<vmem>>, vector<128x128xf32>
      %38 = arith.addf %37, %20 : vector<128x128xf32>
      %c0_29 = arith.constant 0 : index
      %c0_30 = arith.constant 0 : index
      %39 = vector.load %arg9[%c0_29, %c0_30] : memref<128x128xf32, #tpu.memory_space<vmem>>, vector<128x128xf32>
      tpu.vector_store %arg9[%c0_29, %c0_30], %38 {strides = array<i32>} : memref<128x128xf32, #tpu.memory_space<vmem>>, vector<128x128xf32>,
    } else {
    }
    %true_25 = arith.constant true
    %33 = arith.xori %0, %true_25 : i1
    %34 = arith.andi %33, %1 : i1
    %35 = arith.extui %34 : i1 to i32
    %c0_i32_26 = arith.constant 0 : i32
    %36 = arith.cmpi ne, %35, %c0_i32_26 : i32
    scf.if %36 {
      %c0_27 = arith.constant 0 : index
      %c0_28 = arith.constant 0 : index
      %37 = vector.load %arg9[%c0_27, %c0_28] : memref<128x128xf32, #tpu.memory_space<vmem>>, vector<128x128xf32>
      %38 = arith.addf %37, %20 : vector<128x128xf32>
      %c0_29 = arith.constant 0 : index
      %c0_30 = arith.constant 0 : index
      %39 = vector.load %arg8[%c0_29, %c0_30] : memref<1x128xf32, #tpu.memory_space<vmem>>, vector<1x128xf32>
      %40 = vector.broadcast %39 : vector<1x128xf32> to vector<128x128xf32>
      %41 = arith.addf %38, %40 : vector<128x128xf32>
      %cst_31 = arith.constant 0.000000e+00 : f32
      %42 = vector.broadcast %cst_31 : f32 to vector<128x128xf32>
      %43 = arith.maximumf %41, %42 : vector<128x128xf32>
      %c0_32 = arith.constant 0 : index
      %c0_33 = arith.constant 0 : index
      %44 = vector.load %arg9[%c0_32, %c0_33] : memref<128x128xf32, #tpu.memory_space<vmem>>, vector<128x128xf32>
      tpu.vector_store %arg9[%c0_32, %c0_33], %43 {strides = array<i32>} : memref<128x128xf32, #tpu.memory_space<vmem>>, vector<128x128xf32>,
    } else {
    }
    return
  }
  func.func @transform_0(%arg0: i32) -> (i32, i32) {
    %c0_i32 = arith.constant 0 : i32
    %c0_i32_0 = arith.constant 0 : i32
    %c0_i32_1 = arith.constant 0 : i32
    return %c0_i32, %c0_i32_0 : i32, i32
  }
  func.func @transform_1(%arg0: i32) -> (i32, i32) {
    %c0_i32 = arith.constant 0 : i32
    %c0_i32_0 = arith.constant 0 : i32
    %c0_i32_1 = arith.constant 0 : i32
    return %c0_i32, %c0_i32_0 : i32, i32
  }
  func.func @transform_2(%arg0: i32) -> (i32, i32) {
    %c0_i32 = arith.constant 0 : i32
    %c0_i32_0 = arith.constant 0 : i32
    %c0_i32_1 = arith.constant 0 : i32
    return %c0_i32, %c0_i32_0 : i32, i32
  }
  func.func @transform_3(%arg0: i32) -> (i32, i32) {
    %c0_i32 = arith.constant 0 : i32
    %c0_i32_0 = arith.constant 0 : i32
    return %c0_i32, %arg0 : i32, i32
  }
  func.func @transform_4(%arg0: i32) -> (i32, i32) {
    %c0_i32 = arith.constant 0 : i32
    %c0_i32_0 = arith.constant 0 : i32
    return %c0_i32, %arg0 : i32, i32
  }
  func.func @transform_5(%arg0: i32) -> (i32, i32) {
    %c0_i32 = arith.constant 0 : i32
    %c0_i32_0 = arith.constant 0 : i32
    return %c0_i32, %arg0 : i32, i32
  }
  func.func @transform_6(%arg0: i32) -> (i32, i32) {
    %c0_i32 = arith.constant 0 : i32
    %c0_i32_0 = arith.constant 0 : i32
    return %arg0, %c0_i32 : i32, i32
  }
  func.func @transform_7(%arg0: i32) -> (i32, i32) {
    %c0_i32 = arith.constant 0 : i32
    %c0_i32_0 = arith.constant 0 : i32
    %c0_i32_1 = arith.constant 0 : i32
    return %c0_i32, %c0_i32_0 : i32, i32
  }
  func.func @transform_8(%arg0: i32) -> (i32, i32) {
    %c0_i32 = arith.constant 0 : i32
    %c0_i32_0 = arith.constant 0 : i32
    %c0_i32_1 = arith.constant 0 : i32
    return %c0_i32, %c0_i32_0 : i32, i32
  }
}

module attributes {stable_mosaic.version = 11 : i64} {
  func.func @_wave_conv_kernel(%arg0: i32, %arg1: memref<128x128xf32, #tpu.memory_space<vmem>>, %arg2: memref<128x128xf32, #tpu.memory_space<vmem>>, %arg3: memref<128x128xf32, #tpu.memory_space<vmem>>, %arg4: memref<128x128xf32, #tpu.memory_space<vmem>>, %arg5: memref<128x128xf32, #tpu.memory_space<vmem>>, %arg6: memref<1x128xf32, #tpu.memory_space<vmem>>, %arg7: memref<128x128xf32, #tpu.memory_space<vmem>>, %arg8: memref<1x128xf32, #tpu.memory_space<vmem>>, %arg9: memref<128x128xf32, #tpu.memory_space<vmem>>) attributes {dimension_semantics = [#tpu.dimension_semantics<arbitrary>], iteration_bounds = array<i64: 1>, scalar_prefetch = 0 : i64, scratch_operands = 0 : i64, tpu.core_type = #tpu.core_type<tc>, window_params = [{pipeline_mode = #tpu.pipeline_mode<synchronous>, transform_indices = @transform_0, window_bounds = array<i64: 128, 128>}, {pipeline_mode = #tpu.pipeline_mode<synchronous>, transform_indices = @transform_1, window_bounds = array<i64: 128, 128>}, {pipeline_mode = #tpu.pipeline_mode<synchronous>, transform_indices = @transform_2, window_bounds = array<i64: 128, 128>}, {transform_indices = @transform_3, window_bounds = array<i64: 128, 128>}, {transform_indices = @transform_4, window_bounds = array<i64: 128, 128>}, {transform_indices = @transform_5, window_bounds = array<i64: 1, 128>}, {transform_indices = @transform_6, window_bounds = array<i64: 128, 128>}, {pipeline_mode = #tpu.pipeline_mode<synchronous>, transform_indices = @transform_7, window_bounds = array<i64: 1, 128>}, {pipeline_mode = #tpu.pipeline_mode<synchronous>, transform_indices = @transform_8, window_bounds = array<i64: 128, 128>}]} {
    %c0_i32 = arith.constant 0 : i32
    %0 = arith.cmpi eq, %arg0, %c0_i32 : i32
    %c0_i32_0 = arith.constant 0 : i32
    %1 = arith.cmpi eq, %arg0, %c0_i32_0 : i32
    %c0 = arith.constant 0 : index
    %c0_1 = arith.constant 0 : index
    %2 = vector.load %arg1[%c0, %c0_1] : memref<128x128xf32, #tpu.memory_space<vmem>>, vector<128x128xf32>
    %c0_2 = arith.constant 0 : index
    %c0_3 = arith.constant 0 : index
    %3 = vector.load %arg2[%c0_2, %c0_3] : memref<128x128xf32, #tpu.memory_space<vmem>>, vector<128x128xf32>
    %c0_4 = arith.constant 0 : index
    %c0_5 = arith.constant 0 : index
    %4 = vector.load %arg3[%c0_4, %c0_5] : memref<128x128xf32, #tpu.memory_space<vmem>>, vector<128x128xf32>
    %c0_6 = arith.constant 0 : index
    %c0_7 = arith.constant 0 : index
    %5 = vector.load %arg4[%c0_6, %c0_7] : memref<128x128xf32, #tpu.memory_space<vmem>>, vector<128x128xf32>
    %c0_8 = arith.constant 0 : index
    %c0_9 = arith.constant 0 : index
    %6 = vector.load %arg5[%c0_8, %c0_9] : memref<128x128xf32, #tpu.memory_space<vmem>>, vector<128x128xf32>
    %cst = arith.constant dense<0.000000e+00> : vector<128x128xf32>
    %7 = tpu.matmul %2, %6, %cst {dimension_numbers = #tpu.dot_dimension_numbers<[1], [0], [0], [1], [0, 0, 1, 1], [], []>} : vector<128x128xf32>, vector<128x128xf32>, vector<128x128xf32> -> vector<128x128xf32>
    %c0_10 = arith.constant 0 : index
    %c0_11 = arith.constant 0 : index
    %8 = vector.load %arg6[%c0_10, %c0_11] : memref<1x128xf32, #tpu.memory_space<vmem>>, vector<1x128xf32>
    %9 = vector.broadcast %8 : vector<1x128xf32> to vector<128x128xf32>
    %10 = arith.addf %7, %9 : vector<128x128xf32>
    %cst_12 = arith.constant dense<0.000000e+00> : vector<128x128xf32>
    %11 = tpu.matmul %4, %10, %cst_12 {dimension_numbers = #tpu.dot_dimension_numbers<[1], [0], [0], [1], [0, 0, 1, 1], [], []>} : vector<128x128xf32>, vector<128x128xf32>, vector<128x128xf32> -> vector<128x128xf32>
    %12 = arith.mulf %5, %11 : vector<128x128xf32>
    %cst_13 = arith.constant dense<0.000000e+00> : vector<128x128xf32>
    %13 = tpu.matmul %3, %12, %cst_13 {dimension_numbers = #tpu.dot_dimension_numbers<[1], [0], [0], [1], [0, 0, 1, 1], [], []>} : vector<128x128xf32>, vector<128x128xf32>, vector<128x128xf32> -> vector<128x128xf32>
    %cst_14 = arith.constant 0.000000e+00 : f32
    %14 = vector.broadcast %cst_14 : f32 to vector<128x128xf32>
    %15 = arith.maximumf %13, %14 : vector<128x128xf32>
    %cst_15 = arith.constant dense<0.000000e+00> : vector<128x128xf32>
    %16 = tpu.matmul %4, %15, %cst_15 {dimension_numbers = #tpu.dot_dimension_numbers<[1], [0], [0], [1], [0, 0, 1, 1], [], []>} : vector<128x128xf32>, vector<128x128xf32>, vector<128x128xf32> -> vector<128x128xf32>
    %17 = arith.mulf %5, %16 : vector<128x128xf32>
    %cst_16 = arith.constant dense<0.000000e+00> : vector<128x128xf32>
    %18 = tpu.matmul %3, %17, %cst_16 {dimension_numbers = #tpu.dot_dimension_numbers<[1], [0], [0], [1], [0, 0, 1, 1], [], []>} : vector<128x128xf32>, vector<128x128xf32>, vector<128x128xf32> -> vector<128x128xf32>
    %c0_17 = arith.constant 0 : index
    %c0_18 = arith.constant 0 : index
    %19 = vector.load %arg7[%c0_17, %c0_18] : memref<128x128xf32, #tpu.memory_space<vmem>>, vector<128x128xf32>
    %cst_19 = arith.constant dense<0.000000e+00> : vector<128x128xf32>
    %20 = tpu.matmul %18, %19, %cst_19 {dimension_numbers = #tpu.dot_dimension_numbers<[1], [0], [0], [1], [0, 0, 1, 1], [], []>} : vector<128x128xf32>, vector<128x128xf32>, vector<128x128xf32> -> vector<128x128xf32>
    %21 = arith.andi %0, %1 : i1
    %22 = arith.extui %21 : i1 to i32
    %c0_i32_20 = arith.constant 0 : i32
    %23 = arith.cmpi ne, %22, %c0_i32_20 : i32
    scf.if %23 {
      %c0_27 = arith.constant 0 : index
      %c0_28 = arith.constant 0 : index
      %37 = vector.load %arg8[%c0_27, %c0_28] : memref<1x128xf32, #tpu.memory_space<vmem>>, vector<1x128xf32>
      %38 = vector.broadcast %37 : vector<1x128xf32> to vector<128x128xf32>
      %39 = arith.addf %20, %38 : vector<128x128xf32>
      %cst_29 = arith.constant 0.000000e+00 : f32
      %40 = vector.broadcast %cst_29 : f32 to vector<128x128xf32>
      %41 = arith.maximumf %39, %40 : vector<128x128xf32>
      %c0_30 = arith.constant 0 : index
      %c0_31 = arith.constant 0 : index
      %42 = vector.load %arg9[%c0_30, %c0_31] : memref<128x128xf32, #tpu.memory_space<vmem>>, vector<128x128xf32>
      tpu.vector_store %arg9[%c0_30, %c0_31], %41 {strides = array<i32>} : memref<128x128xf32, #tpu.memory_space<vmem>>, vector<128x128xf32>,
    } else {
    }
    %true = arith.constant true
    %24 = arith.xori %1, %true : i1
    %25 = arith.andi %0, %24 : i1
    %26 = arith.extui %25 : i1 to i32
    %c0_i32_21 = arith.constant 0 : i32
    %27 = arith.cmpi ne, %26, %c0_i32_21 : i32
    scf.if %27 {
      %c0_27 = arith.constant 0 : index
      %c0_28 = arith.constant 0 : index
      %37 = vector.load %arg9[%c0_27, %c0_28] : memref<128x128xf32, #tpu.memory_space<vmem>>, vector<128x128xf32>
      tpu.vector_store %arg9[%c0_27, %c0_28], %20 {strides = array<i32>} : memref<128x128xf32, #tpu.memory_space<vmem>>, vector<128x128xf32>,
    } else {
    }
    %true_22 = arith.constant true
    %28 = arith.xori %0, %true_22 : i1
    %true_23 = arith.constant true
    %29 = arith.xori %1, %true_23 : i1
    %30 = arith.andi %28, %29 : i1
    %31 = arith.extui %30 : i1 to i32
    %c0_i32_24 = arith.constant 0 : i32
    %32 = arith.cmpi ne, %31, %c0_i32_24 : i32
    scf.if %32 {
      %c0_27 = arith.constant 0 : index
      %c0_28 = arith.constant 0 : index
      %37 = vector.load %arg9[%c0_27, %c0_28] : memref<128x128xf32, #tpu.memory_space<vmem>>, vector<128x128xf32>
      %38 = arith.addf %37, %20 : vector<128x128xf32>
      %c0_29 = arith.constant 0 : index
      %c0_30 = arith.constant 0 : index
      %39 = vector.load %arg9[%c0_29, %c0_30] : memref<128x128xf32, #tpu.memory_space<vmem>>, vector<128x128xf32>
      tpu.vector_store %arg9[%c0_29, %c0_30], %38 {strides = array<i32>} : memref<128x128xf32, #tpu.memory_space<vmem>>, vector<128x128xf32>,
    } else {
    }
    %true_25 = arith.constant true
    %33 = arith.xori %0, %true_25 : i1
    %34 = arith.andi %33, %1 : i1
    %35 = arith.extui %34 : i1 to i32
    %c0_i32_26 = arith.constant 0 : i32
    %36 = arith.cmpi ne, %35, %c0_i32_26 : i32
    scf.if %36 {
      %c0_27 = arith.constant 0 : index
      %c0_28 = arith.constant 0 : index
      %37 = vector.load %arg9[%c0_27, %c0_28] : memref<128x128xf32, #tpu.memory_space<vmem>>, vector<128x128xf32>
      %38 = arith.addf %37, %20 : vector<128x128xf32>
      %c0_29 = arith.constant 0 : index
      %c0_30 = arith.constant 0 : index
      %39 = vector.load %arg8[%c0_29, %c0_30] : memref<1x128xf32, #tpu.memory_space<vmem>>, vector<1x128xf32>
      %40 = vector.broadcast %39 : vector<1x128xf32> to vector<128x128xf32>
      %41 = arith.addf %38, %40 : vector<128x128xf32>
      %cst_31 = arith.constant 0.000000e+00 : f32
      %42 = vector.broadcast %cst_31 : f32 to vector<128x128xf32>
      %43 = arith.maximumf %41, %42 : vector<128x128xf32>
      %c0_32 = arith.constant 0 : index
      %c0_33 = arith.constant 0 : index
      %44 = vector.load %arg9[%c0_32, %c0_33] : memref<128x128xf32, #tpu.memory_space<vmem>>, vector<128x128xf32>
      tpu.vector_store %arg9[%c0_32, %c0_33], %43 {strides = array<i32>} : memref<128x128xf32, #tpu.memory_space<vmem>>, vector<128x128xf32>,
    } else {
    }
    return
  }
  func.func @transform_0(%arg0: i32) -> (i32, i32) {
    %c0_i32 = arith.constant 0 : i32
    %c0_i32_0 = arith.constant 0 : i32
    %c0_i32_1 = arith.constant 0 : i32
    return %c0_i32, %c0_i32_0 : i32, i32
  }
  func.func @transform_1(%arg0: i32) -> (i32, i32) {
    %c0_i32 = arith.constant 0 : i32
    %c0_i32_0 = arith.constant 0 : i32
    %c0_i32_1 = arith.constant 0 : i32
    return %c0_i32, %c0_i32_0 : i32, i32
  }
  func.func @transform_2(%arg0: i32) -> (i32, i32) {
    %c0_i32 = arith.constant 0 : i32
    %c0_i32_0 = arith.constant 0 : i32
    %c0_i32_1 = arith.constant 0 : i32
    return %c0_i32, %c0_i32_0 : i32, i32
  }
  func.func @transform_3(%arg0: i32) -> (i32, i32) {
    %c0_i32 = arith.constant 0 : i32
    %c0_i32_0 = arith.constant 0 : i32
    return %c0_i32, %arg0 : i32, i32
  }
  func.func @transform_4(%arg0: i32) -> (i32, i32) {
    %c0_i32 = arith.constant 0 : i32
    %c0_i32_0 = arith.constant 0 : i32
    return %c0_i32, %arg0 : i32, i32
  }
  func.func @transform_5(%arg0: i32) -> (i32, i32) {
    %c0_i32 = arith.constant 0 : i32
    %c0_i32_0 = arith.constant 0 : i32
    return %c0_i32, %arg0 : i32, i32
  }
  func.func @transform_6(%arg0: i32) -> (i32, i32) {
    %c0_i32 = arith.constant 0 : i32
    %c0_i32_0 = arith.constant 0 : i32
    return %arg0, %c0_i32 : i32, i32
  }
  func.func @transform_7(%arg0: i32) -> (i32, i32) {
    %c0_i32 = arith.constant 0 : i32
    %c0_i32_0 = arith.constant 0 : i32
    %c0_i32_1 = arith.constant 0 : i32
    return %c0_i32, %c0_i32_0 : i32, i32
  }
  func.func @transform_8(%arg0: i32) -> (i32, i32) {
    %c0_i32 = arith.constant 0 : i32
    %c0_i32_0 = arith.constant 0 : i32
    %c0_i32_1 = arith.constant 0 : i32
    return %c0_i32, %c0_i32_0 : i32, i32
  }
}

</mosaic_0001>

<bundles_post_ra>
// kernel: tpu_custom_call.1
= control target key start
LH: loop header
LB: loop body
LE: loop exit
PB: predicated region body
PF: predicated region fallthrough
CT: control target
= control target key end

     0   :  { %13 = vsyncpa [#allocation3], 0  ;;  %s1431_s0 = inlined_call_operand.hbm [shape: f32[128,128], index: 0, kind: input, shape index: {}]   ;;  %s1432_s1 = inlined_call_operand.hbm [shape: f32[128,128], index: 1, kind: input, shape index: {}]   ;;  %s1433_s2 = inlined_call_operand.hbm [shape: f32[128,128], index: 2, kind: input, shape index: {}]   ;;  %s1434_s3 = inlined_call_operand.hbm [shape: f32[128,128], index: 3, kind: input, shape index: {}]   ;;  %s1435_s4 = inlined_call_operand.hbm [shape: f32[128,128], index: 4, kind: input, shape index: {}]   ;;  %s1436_s5 = inlined_call_operand.vmem [shape: f32[1,128], index: 5, kind: input, shape index: {}]   ;;  %s1437_s6 = inlined_call_operand.hbm [shape: f32[128,128], index: 6, kind: input, shape index: {}]   ;;  %s1438_s7 = inlined_call_operand.vmem [shape: f32[1,128], index: 7, kind: input, shape index: {}]   ;;  %s1439_s8 = inlined_call_operand.hbm [shape: f32[128,128], index: 8, kind: output, shape index: {}]  }
   0x1   :  { %14 = vsyncpa [#allocation6], 0 }
   0x2   :  { %15 = vsyncpa [#allocation9], 0 }
   0x3   :  { %16 = vsyncpa [#allocation12], 0 }
   0x4   :  { %17 = vsyncpa [#allocation4], 0  ;;  %s35_s29 = sshll.u32 %s1432_s1, 4  ;;  %s1119_s30 = smov [#allocation5]   ;;  %s36_s29 = int_to_ptr.hbm [resolvable:$true] %s35_s29 }
   0x5   :  { %s37_s9 = sshll.u32 %s1119_s30, 4  ;;  %s61_s12 = sshll.u32 %s1434_s3, 4  ;;  %s38_s9 = int_to_ptr.vmem [resolvable:$true] %s37_s9  ;;  %s62_s12 = int_to_ptr.hbm [resolvable:$true] %s61_s12 }
   0x6   :  { %s1120_s13 = smov 128   ;;  %s1121_s14 = smov 8  }
   0x7   :  { %43 = dma.hbm_to_vmem [thread:$0]  %s36_s29, 2048, %s38_s9, [#allocation6], %s1120_s13, %s1120_s13, %s1121_s14  }
   0x8   :  { %s1122_s15 = smov [#allocation8]   ;;  %s22_s1 = sshll.u32 %s1431_s0, 4  ;;  %s23_s1 = int_to_ptr.hbm [resolvable:$true] %s22_s1 }
   0x9   :  { %s63_s16 = sshll.u32 %s1122_s15, 4  ;;  %s48_s20 = sshll.u32 %s1433_s2, 4  ;;  %s64_s16 = int_to_ptr.vmem [resolvable:$true] %s63_s16  ;;  %s49_s20 = int_to_ptr.hbm [resolvable:$true] %s48_s20 }
   0xa   :  { %69 = dma.hbm_to_vmem [thread:$0]  %s62_s12, 2048, %s64_s16, [#allocation9], %s1120_s13, %s1120_s13, %s1121_s14  }
   0xb   :  { %s1123_s21 = smov [#allocation2]   ;;  %s1124_s23 = smov [#allocation7]  }
   0xc   :  { %s24_s22 = sshll.u32 %s1123_s21, 4  ;;  %s50_s0 = sshll.u32 %s1124_s23, 4  ;;  %s25_s22 = int_to_ptr.vmem [resolvable:$true] %s24_s22  ;;  %s51_s0 = int_to_ptr.vmem [resolvable:$true] %s50_s0 }
   0xd   :  { %30 = dma.hbm_to_vmem [thread:$0]  %s23_s1, 2048, %s25_s22, [#allocation3], %s1120_s13, %s1120_s13, %s1121_s14  }
   0xe   :  { %s74_s26 = sshll.u32 %s1435_s4, 4  ;;  %s89_s28 = sshll.u32 %s1437_s6, 4  ;;  %s75_s26 = int_to_ptr.hbm [resolvable:$true] %s74_s26  ;;  %s90_s28 = int_to_ptr.hbm [resolvable:$true] %s89_s28 }
   0xf   :  { %56 = dma.hbm_to_vmem [thread:$0]  %s49_s20, 2048, %s51_s0, [#allocation6], %s1120_s13, %s1120_s13, %s1121_s14  }
  0x10   :  { %s1125_s29 = smov [#allocation10]   ;;  %s1126_s9 = smov [#allocation11]  }
  0x11   :  { %s76_s30 = sshll.u32 %s1125_s29, 4  ;;  %s91_s4 = sshll.u32 %s1126_s9, 4  ;;  %s77_s30 = int_to_ptr.vmem [resolvable:$true] %s76_s30  ;;  %s92_s4 = int_to_ptr.vmem [resolvable:$true] %s91_s4 }
  0x12   :  { %82 = dma.hbm_to_vmem [thread:$0]  %s75_s26, 2048, %s77_s30, [#allocation9], %s1120_s13, %s1120_s13, %s1121_s14  }
  0x13   :  { %97 = dma.hbm_to_vmem [thread:$0]  %s90_s28, 2048, %s92_s4, [#allocation12], %s1120_s13, %s1120_s13, %s1121_s14  }
  0x14   :  { %1109 = dma.done.wait [#allocation3], 2048  }
  0x15   :  { %1110 = vsyncadd [#allocation3], 4294965248 }
  0x16   :  { %1111 = dma.done.wait [#allocation6], 4096  }
  0x17   :  { %1112 = vsyncadd [#allocation6], 4294963200 }
  0x18   :  { %1113 = dma.done.wait [#allocation9], 4096  }
  0x19   :  { %1114 = vsyncadd [#allocation9], 4294963200 }
  0x1a   :  { %1115 = dma.done.wait [#allocation12], 2048  }
  0x1b   :  { %1116 = vsyncadd [#allocation12], 4294965248  ;;  %v204_v0 = vld [vmem:[#allocation10 + $0x78] sm:$0xff]  ;;  %v203_v1 = vld [vmem:[#allocation10 + $0x70] sm:$0xff]  ;;  %s882_s17 = sshll.u32 %s1439_s8, 4  ;;  %s883_s17 = int_to_ptr.hbm [resolvable:$true] %s882_s17 }
  0x1c   :  { %898 = vmatpush.msra.mxu2 %v204_v0  ;;  %209 = vmatpush.msra.mxu0 %v204_v0  ;;  %v202_v2 = vld [vmem:[#allocation10 + $0x68] sm:$0xff]  ;;  %v201_v3 = vld [vmem:[#allocation10 + $0x60] sm:$0xff]  ;;  %v200_v4 = vld [vmem:[#allocation10 + $0x58] sm:$0xff] }
  0x1d   :  { %v199_v5 = vld [vmem:[#allocation10 + $0x50] sm:$0xff]  ;;  %v198_v6 = vld [vmem:[#allocation10 + $0x48] sm:$0xff]  ;;  %v197_v7 = vld [vmem:[#allocation10 + $0x40] sm:$0xff] }
  0x1e   :  { %899 = vmatpush.msra.mxu2 %v203_v1  ;;  %210 = vmatpush.msra.mxu0 %v203_v1  ;;  %v196_v8 = vld [vmem:[#allocation10 + $0x38] sm:$0xff]  ;;  %v195_v9 = vld [vmem:[#allocation10 + $0x30] sm:$0xff]  ;;  %v194_v10 = vld [vmem:[#allocation10 + $0x28] sm:$0xff] }
  0x1f   :  { %v193_v11 = vld [vmem:[#allocation10 + $0x20] sm:$0xff]  ;;  %v192_v12 = vld [vmem:[#allocation10 + $0x18] sm:$0xff]  ;;  %v191_v13 = vld [vmem:[#allocation10 + $0x10] sm:$0xff] }
  0x20   :  { %900 = vmatpush.msra.mxu2 %v202_v2  ;;  %211 = vmatpush.msra.mxu0 %v202_v2  ;;  %v190_v14 = vld [vmem:[#allocation10 + $0x8] sm:$0xff]  ;;  %v189_v15 = vld [vmem:[#allocation10] sm:$0xff]  ;;  %v135_v20 = vld [vmem:[#allocation2 + $0x50] sm:$0xff] }
  0x21   :  { %v133_v16 = vld [vmem:[#allocation2 + $0x40] sm:$0xff]  ;;  %v134_v18 = vld [vmem:[#allocation2 + $0x48] sm:$0xff]  ;;  %v127_v21 = vld [vmem:[#allocation2 + $0x10] sm:$0xff] }
  0x22   :  { %901 = vmatpush.msra.mxu2 %v201_v3  ;;  %212 = vmatpush.msra.mxu0 %v201_v3  ;;  %v125_v17 = vld [vmem:[#allocation2] sm:$0xff]  ;;  %v126_v19 = vld [vmem:[#allocation2 + $0x8] sm:$0xff]  ;;  %v136_v22 = vld [vmem:[#allocation2 + $0x58] sm:$0xff] }
  0x23   :  { %v128_v23 = vld [vmem:[#allocation2 + $0x18] sm:$0xff]  ;;  %v137_v24 = vld [vmem:[#allocation2 + $0x60] sm:$0xff]  ;;  %v138_v26 = vld [vmem:[#allocation2 + $0x68] sm:$0xff] }
  0x24   :  { %902 = vmatpush.msra.mxu2 %v200_v4  ;;  %213 = vmatpush.msra.mxu0 %v200_v4  ;;  %v129_v25 = vld [vmem:[#allocation2 + $0x20] sm:$0xff]  ;;  %v130_v27 = vld [vmem:[#allocation2 + $0x28] sm:$0xff]  ;;  %v139_v28 = vld [vmem:[#allocation2 + $0x70] sm:$0xff] }
  0x25   :  { %v131_v29 = vld [vmem:[#allocation2 + $0x30] sm:$0xff]  ;;  %v140_v30 = vld [vmem:[#allocation2 + $0x78] sm:$0xff]  ;;  %v939_v45 = vld [vmem:[%s1436_s5] ss:$0 sm:$0xff] }
  0x26   :  { %903 = vmatpush.msra.mxu2 %v199_v5  ;;  %214 = vmatpush.msra.mxu0 %v199_v5  ;;  %v132_v31 = vld [vmem:[#allocation2 + $0x38] sm:$0xff]  ;;  %v1212_v1 = vld [vmem:[#allocation7 + $0x40] sm:$0xff]  ;;  %v1218_v3 = vld [vmem:[#allocation7 + $0x48] sm:$0xff] }
  0x27   :  { %v1214_v2 = vld [vmem:[#allocation7] sm:$0xff]  ;;  %v1220_v4 = vld [vmem:[#allocation7 + $0x8] sm:$0xff]  ;;  %v1224_v5 = vld [vmem:[#allocation7 + $0x50] sm:$0xff] }
  0x28   :  { %904 = vmatpush.msra.mxu2 %v198_v6  ;;  %215 = vmatpush.msra.mxu0 %v198_v6  ;;  %v1226_v6 = vld [vmem:[#allocation7 + $0x10] sm:$0xff] }
  0x2a   :  { %905 = vmatpush.msra.mxu2 %v197_v7  ;;  %216 = vmatpush.msra.mxu0 %v197_v7  ;;  %v1230_v7 = vld [vmem:[#allocation7 + $0x58] sm:$0xff] }
  0x2c   :  { %906 = vmatpush.msra.mxu2 %v196_v8  ;;  %217 = vmatpush.msra.mxu0 %v196_v8  ;;  %v1232_v8 = vld [vmem:[#allocation7 + $0x18] sm:$0xff] }
  0x2e   :  { %907 = vmatpush.msra.mxu2 %v195_v9  ;;  %218 = vmatpush.msra.mxu0 %v195_v9  ;;  %v1236_v9 = vld [vmem:[#allocation7 + $0x60] sm:$0xff] }
  0x30   :  { %908 = vmatpush.msra.mxu2 %v194_v10  ;;  %219 = vmatpush.msra.mxu0 %v194_v10  ;;  %v1238_v10 = vld [vmem:[#allocation7 + $0x20] sm:$0xff] }
  0x32   :  { %909 = vmatpush.msra.mxu2 %v193_v11  ;;  %220 = vmatpush.msra.mxu0 %v193_v11  ;;  %v1242_v11 = vld [vmem:[#allocation7 + $0x68] sm:$0xff] }
  0x34   :  { %910 = vmatpush.msra.mxu2 %v192_v12  ;;  %221 = vmatpush.msra.mxu0 %v192_v12  ;;  %v1244_v12 = vld [vmem:[#allocation7 + $0x28] sm:$0xff] }
  0x36   :  { %911 = vmatpush.msra.mxu2 %v191_v13  ;;  %222 = vmatpush.msra.mxu0 %v191_v13  ;;  %v1248_v13 = vld [vmem:[#allocation7 + $0x70] sm:$0xff] }
  0x38   :  { %912 = vmatpush.msra.mxu2 %v190_v14  ;;  %223 = vmatpush.msra.mxu0 %v190_v14  ;;  %v1250_v14 = vld [vmem:[#allocation7 + $0x30] sm:$0xff] }
  0x3a   :  { %913 = vmatpush.msra.mxu2 %v189_v15  ;;  %224 = vmatpush.msra.mxu0 %v189_v15  ;;  %v1254_v15 = vld [vmem:[#allocation7 + $0x78] sm:$0xff] }
  0x3b   :  { %249 = vmatmul.f32.vlgmr.msra.gmra.mxu2 %v133_v16  ;;  %225 = vmatmul.f32.vlgmr.msra.gmra.mxu0 %v125_v17  ;;  %v1256_v16 = vld [vmem:[#allocation7 + $0x38] sm:$0xff] }
  0x43   :  { %252 = vmatmul.f32.gmra.mxu2 %v134_v18  ;;  %228 = vmatmul.f32.gmra.mxu0 %v126_v19 }
  0x4b   :  { %255 = vmatmul.f32.gmra.mxu2 %v135_v20  ;;  %231 = vmatmul.f32.gmra.mxu0 %v127_v21 }
  0x53   :  { %258 = vmatmul.f32.gmra.mxu2 %v136_v22  ;;  %234 = vmatmul.f32.gmra.mxu0 %v128_v23 }
  0x5b   :  { %261 = vmatmul.f32.gmra.mxu2 %v137_v24  ;;  %237 = vmatmul.f32.gmra.mxu0 %v129_v25 }
  0x63   :  { %264 = vmatmul.f32.gmra.mxu2 %v138_v26  ;;  %240 = vmatmul.f32.gmra.mxu0 %v130_v27 }
  0x6b   :  { %267 = vmatmul.f32.gmra.mxu2 %v139_v28  ;;  %243 = vmatmul.f32.gmra.mxu0 %v131_v29 }
  0x73   :  { %270 = vmatmul.f32.gmra.mxu2 %v140_v30  ;;  %246 = vmatmul.f32.gmra.mxu0 %v132_v31  ;;  %v1260_v30 = vld [vmem:[#allocation8 + $0x78] sm:$0xff]  ;;  %v1262_v31 = vld [vmem:[#allocation8 + $0x70] sm:$0xff] }
  0xb8   :  { %v226_v32 = vpop.f32.mrf.mxu0 }
  0xb9   :  { %v227_v0 = vadd.f32 %v939_v45, %v226_v32 }
  0xbe   :  { %v250_v33 = vpop.f32.mrf.mxu2 }
  0xbf   :  { %v251_v56 = vadd.f32 %v939_v45, %v250_v33 }
  0xc0   :  { %v229_v35 = vpop.f32.mrf.mxu0 }
  0xc1   :  { %v230_v63 = vadd.f32 %v939_v45, %v229_v35 }
  0xc6   :  { %v253_v34 = vpop.f32.mrf.mxu2 }
  0xc7   :  { %v254_v55 = vadd.f32 %v939_v45, %v253_v34  ;;  %v1265_v34 = vld [vmem:[#allocation8 + $0x68] sm:$0xff] }
  0xc8   :  { %v232_v37 = vpop.f32.mrf.mxu0 }
  0xc9   :  { %v233_v62 = vadd.f32 %v939_v45, %v232_v37  ;;  %v1268_v37 = vld [vmem:[#allocation8 + $0x60] sm:$0xff] }
  0xce   :  { %v256_v36 = vpop.f32.mrf.mxu2 }
  0xcf   :  { %v257_v53 = vadd.f32 %v939_v45, %v256_v36 }
  0xd0   :  { %v235_v39 = vpop.f32.mrf.mxu0 }
  0xd1   :  { %v236_v61 = vadd.f32 %v939_v45, %v235_v39  ;;  %v1271_v39 = vld [vmem:[#allocation8 + $0x58] sm:$0xff] }
  0xd6   :  { %v259_v38 = vpop.f32.mrf.mxu2 }
  0xd7   :  { %v260_v52 = vadd.f32 %v939_v45, %v259_v38 }
  0xd8   :  { %v238_v41 = vpop.f32.mrf.mxu0 }
  0xd9   :  { %v239_v60 = vadd.f32 %v939_v45, %v238_v41  ;;  %v1274_v41 = vld [vmem:[#allocation8 + $0x50] sm:$0xff] }
  0xde   :  { %v262_v40 = vpop.f32.mrf.mxu2 }
  0xdf   :  { %v263_v51 = vadd.f32 %v939_v45, %v262_v40 }
  0xe0   :  { %v241_v44 = vpop.f32.mrf.mxu0 }
  0xe1   :  { %v242_v59 = vadd.f32 %v939_v45, %v241_v44 }
  0xe6   :  { %v265_v42 = vpop.f32.mrf.mxu2 }
  0xe7   :  { %v266_v50 = vadd.f32 %v939_v45, %v265_v42 }
  0xe8   :  { %v244_v48 = vpop.f32.mrf.mxu0 }
  0xe9   :  { %v245_v58 = vadd.f32 %v939_v45, %v244_v48 }
  0xee   :  { %v268_v43 = vpop.f32.mrf.mxu2 }
  0xef   :  { %v269_v49 = vadd.f32 %v939_v45, %v268_v43  ;;  %v1277_v43 = vld [vmem:[#allocation8 + $0x48] sm:$0xff] }
  0xf0   :  { %v247_v54 = vpop.f32.mrf.mxu0 }
  0xf1   :  { %v248_v57 = vadd.f32 %v939_v45, %v247_v54  ;;  %v1292_v54 = vld [vmem:[#allocation8 + $0x20] sm:$0xff] }
  0xf6   :  { %v271_v46 = vpop.f32.mrf.mxu2 }
  0xf7   :  { %v272_v47 = vadd.f32 %v939_v45, %v271_v46  ;;  %v1280_v45 = vld [vmem:[#allocation8 + $0x40] sm:$0xff]  ;;  %v1282_v46 = vld [vmem:[#allocation8 + $0x38] sm:$0xff] }
  0xf9   :  { %274 = vmatpush.msra.mxu1 %v272_v47  ;;  %914 = vmatpush.msra.mxu3 %v272_v47 }
  0xfb   :  { %275 = vmatpush.msra.mxu1 %v269_v49  ;;  %915 = vmatpush.msra.mxu3 %v269_v49 }
  0xfd   :  { %276 = vmatpush.msra.mxu1 %v266_v50  ;;  %916 = vmatpush.msra.mxu3 %v266_v50 }
  0xff   :  { %277 = vmatpush.msra.mxu1 %v263_v51  ;;  %917 = vmatpush.msra.mxu3 %v263_v51  ;;  %v1287_v51 = vld [vmem:[#allocation8 + $0x30] sm:$0xff] }
 0x101   :  { %278 = vmatpush.msra.mxu1 %v260_v52  ;;  %918 = vmatpush.msra.mxu3 %v260_v52  ;;  %v1289_v52 = vld [vmem:[#allocation8 + $0x28] sm:$0xff] }
 0x103   :  { %279 = vmatpush.msra.mxu1 %v257_v53  ;;  %919 = vmatpush.msra.mxu3 %v257_v53 }
 0x105   :  { %280 = vmatpush.msra.mxu1 %v254_v55  ;;  %920 = vmatpush.msra.mxu3 %v254_v55 }
 0x107   :  { %281 = vmatpush.msra.mxu1 %v251_v56  ;;  %921 = vmatpush.msra.mxu3 %v251_v56  ;;  %v1295_v56 = vld [vmem:[#allocation8 + $0x18] sm:$0xff] }
 0x109   :  { %282 = vmatpush.msra.mxu1 %v248_v57  ;;  %922 = vmatpush.msra.mxu3 %v248_v57 }
 0x10b   :  { %283 = vmatpush.msra.mxu1 %v245_v58  ;;  %923 = vmatpush.msra.mxu3 %v245_v58  ;;  %v1298_v58 = vld [vmem:[#allocation8 + $0x10] sm:$0xff] }
 0x10d   :  { %284 = vmatpush.msra.mxu1 %v242_v59  ;;  %924 = vmatpush.msra.mxu3 %v242_v59 }
 0x10f   :  { %285 = vmatpush.msra.mxu1 %v239_v60  ;;  %925 = vmatpush.msra.mxu3 %v239_v60  ;;  %v1301_v60 = vld [vmem:[#allocation8 + $0x8] sm:$0xff] }
 0x111   :  { %286 = vmatpush.msra.mxu1 %v236_v61  ;;  %926 = vmatpush.msra.mxu3 %v236_v61 }
 0x113   :  { %287 = vmatpush.msra.mxu1 %v233_v62  ;;  %927 = vmatpush.msra.mxu3 %v233_v62  ;;  %v1304_v62 = vld [vmem:[#allocation8] sm:$0xff] }
 0x115   :  { %288 = vmatpush.msra.mxu1 %v230_v63  ;;  %928 = vmatpush.msra.mxu3 %v230_v63 }
 0x117   :  { %289 = vmatpush.msra.mxu1 %v227_v0  ;;  %929 = vmatpush.msra.mxu3 %v227_v0 }
 0x118   :  { %314 = vmatmul.f32.vlgmr.msra.gmra.mxu3 %v1212_v1  ;;  %290 = vmatmul.f32.vlgmr.msra.gmra.mxu1 %v1214_v2 }
 0x120   :  { %317 = vmatmul.f32.gmra.mxu3 %v1218_v3  ;;  %293 = vmatmul.f32.gmra.mxu1 %v1220_v4 }
 0x128   :  { %320 = vmatmul.f32.gmra.mxu3 %v1224_v5  ;;  %296 = vmatmul.f32.gmra.mxu1 %v1226_v6 }
 0x130   :  { %323 = vmatmul.f32.gmra.mxu3 %v1230_v7  ;;  %299 = vmatmul.f32.gmra.mxu1 %v1232_v8 }
 0x138   :  { %326 = vmatmul.f32.gmra.mxu3 %v1236_v9  ;;  %302 = vmatmul.f32.gmra.mxu1 %v1238_v10 }
 0x140   :  { %329 = vmatmul.f32.gmra.mxu3 %v1242_v11  ;;  %305 = vmatmul.f32.gmra.mxu1 %v1244_v12 }
 0x148   :  { %332 = vmatmul.f32.gmra.mxu3 %v1248_v13  ;;  %308 = vmatmul.f32.gmra.mxu1 %v1250_v14 }
 0x150   :  { %335 = vmatmul.f32.gmra.mxu3 %v1254_v15  ;;  %311 = vmatmul.f32.gmra.mxu1 %v1256_v16 }
 0x195   :  { %v291_v17 = vpop.f32.mrf.mxu1 }
 0x196   :  { %v339_v0 = vmul.f32 %v291_v17, %v1304_v62  ;;  %v1323_v17 = vld [vmem:[#allocation5 + $0x28] sm:$0xff] }
 0x197   :  { %1451 = vst [vmem:[#allocation19_spill] sm:$0xff] %v1323_v17 }
 0x19b   :  { %v315_v18 = vpop.f32.mrf.mxu3 }
 0x19c   :  { %v347_v49 = vmul.f32 %v315_v18, %v1280_v45  ;;  %v1308_v18 = vld [vmem:[#allocation5] sm:$0xff] }
 0x19d   :  { %v294_v20 = vpop.f32.mrf.mxu1 }
 0x19e   :  { %v340_v63 = vmul.f32 %v294_v20, %v1301_v60  ;;  %v1320_v20 = vld [vmem:[#allocation5 + $0x20] sm:$0xff] }
 0x1a3   :  { %v318_v19 = vpop.f32.mrf.mxu3 }
 0x1a4   :  { %v348_v48 = vmul.f32 %v318_v19, %v1277_v43  ;;  %v1311_v19 = vld [vmem:[#allocation5 + $0x8] sm:$0xff] }
 0x1a5   :  { %v297_v22 = vpop.f32.mrf.mxu1 }
 0x1a6   :  { %v341_v61 = vmul.f32 %v297_v22, %v1298_v58  ;;  %v1317_v22 = vld [vmem:[#allocation5 + $0x18] sm:$0xff] }
 0x1ab   :  { %v321_v21 = vpop.f32.mrf.mxu3 }
 0x1ac   :  { %v349_v44 = vmul.f32 %v321_v21, %v1274_v41  ;;  %v1314_v21 = vld [vmem:[#allocation5 + $0x10] sm:$0xff] }
 0x1ad   :  { %v300_v24 = vpop.f32.mrf.mxu1 }
 0x1ae   :  { %v342_v59 = vmul.f32 %v300_v24, %v1295_v56  ;;  %v1329_v24 = vld [vmem:[#allocation5 + $0x38] sm:$0xff] }
 0x1af   :  { %1453 = vst [vmem:[#allocation21_spill] sm:$0xff] %v1329_v24 }
 0x1b3   :  { %v324_v23 = vpop.f32.mrf.mxu3 }
 0x1b4   :  { %v350_v42 = vmul.f32 %v324_v23, %v1271_v39  ;;  %v1326_v23 = vld [vmem:[#allocation5 + $0x30] sm:$0xff] }
 0x1b5   :  { %v303_v26 = vpop.f32.mrf.mxu1  ;;  %1452 = vst [vmem:[#allocation20_spill] sm:$0xff] %v1326_v23 }
 0x1b6   :  { %v343_v57 = vmul.f32 %v303_v26, %v1292_v54  ;;  %v1335_v26 = vld [vmem:[#allocation5 + $0x48] sm:$0xff] }
 0x1b7   :  { %1455 = vst [vmem:[#allocation23_spill] sm:$0xff] %v1335_v26 }
 0x1bb   :  { %v327_v25 = vpop.f32.mrf.mxu3 }
 0x1bc   :  { %v351_v40 = vmul.f32 %v327_v25, %v1268_v37  ;;  %v1332_v25 = vld [vmem:[#allocation5 + $0x40] sm:$0xff] }
 0x1bd   :  { %v306_v29 = vpop.f32.mrf.mxu1  ;;  %1454 = vst [vmem:[#allocation22_spill] sm:$0xff] %v1332_v25 }
 0x1be   :  { %v344_v55 = vmul.f32 %v306_v29, %v1289_v52  ;;  %v1344_v29 = vld [vmem:[#allocation5 + $0x60] sm:$0xff] }
 0x1bf   :  { %1458 = vst [vmem:[#allocation26_spill] sm:$0xff] %v1344_v29 }
 0x1c3   :  { %v330_v27 = vpop.f32.mrf.mxu3 }
 0x1c4   :  { %v352_v38 = vmul.f32 %v330_v27, %v1265_v34  ;;  %v1338_v27 = vld [vmem:[#allocation5 + $0x50] sm:$0xff] }
 0x1c5   :  { %v309_v35 = vpop.f32.mrf.mxu1  ;;  %1456 = vst [vmem:[#allocation24_spill] sm:$0xff] %v1338_v27 }
 0x1c6   :  { %v345_v53 = vmul.f32 %v309_v35, %v1287_v51  ;;  %v1353_v35 = vld [vmem:[#allocation5 + $0x78] sm:$0xff] }
 0x1c7   :  { %1461 = vst [vmem:[#allocation29_spill] sm:$0xff] %v1353_v35 }
 0x1cb   :  { %v333_v28 = vpop.f32.mrf.mxu3 }
 0x1cc   :  { %v353_v36 = vmul.f32 %v333_v28, %v1262_v31  ;;  %v1341_v28 = vld [vmem:[#allocation5 + $0x58] sm:$0xff] }
 0x1cd   :  { %v312_v47 = vpop.f32.mrf.mxu1  ;;  %1457 = vst [vmem:[#allocation25_spill] sm:$0xff] %v1341_v28 }
 0x1ce   :  { %v346_v50 = vmul.f32 %v312_v47, %v1282_v46 }
 0x1d3   :  { %v336_v32 = vpop.f32.mrf.mxu3 }
 0x1d4   :  { %v354_v33 = vmul.f32 %v336_v32, %v1260_v30  ;;  %v1347_v32 = vld [vmem:[#allocation5 + $0x68] sm:$0xff] }
 0x1d5   :  { %1459 = vst [vmem:[#allocation27_spill] sm:$0xff] %v1347_v32 }
 0x1d6   :  { %355 = vmatpush.msrb.mxu2 %v354_v33  ;;  %v1350_v33 = vld [vmem:[#allocation5 + $0x70] sm:$0xff] }
 0x1d7   :  { %1460 = vst [vmem:[#allocation28_spill] sm:$0xff] %v1350_v33 }
 0x1d8   :  { %356 = vmatpush.msrb.mxu2 %v353_v36 }
 0x1da   :  { %357 = vmatpush.msrb.mxu2 %v352_v38 }
 0x1dc   :  { %358 = vmatpush.msrb.mxu2 %v351_v40 }
 0x1de   :  { %359 = vmatpush.msrb.mxu2 %v350_v42 }
 0x1e0   :  { %360 = vmatpush.msrb.mxu2 %v349_v44 }
 0x1e2   :  { %361 = vmatpush.msrb.mxu2 %v348_v48 }
 0x1e4   :  { %362 = vmatpush.msrb.mxu2 %v347_v49 }
 0x1e6   :  { %363 = vmatpush.msrb.mxu2 %v346_v50 }
 0x1e8   :  { %364 = vmatpush.msrb.mxu2 %v345_v53 }
 0x1ea   :  { %365 = vmatpush.msrb.mxu2 %v344_v55 }
 0x1ec   :  { %366 = vmatpush.msrb.mxu2 %v343_v57 }
 0x1ee   :  { %367 = vmatpush.msrb.mxu2 %v342_v59 }
 0x1f0   :  { %368 = vmatpush.msrb.mxu2 %v341_v61 }
 0x1f2   :  { %369 = vmatpush.msrb.mxu2 %v340_v63 }
 0x1f4   :  { %370 = vmatpush.msrb.mxu2 %v339_v0 }
 0x1f5   :  { %371 = vmatmul.f32.vlgmr.msrb.gmra.mxu2 %v1308_v18 }
 0x1fd   :  { %374 = vmatmul.f32.gmra.mxu2 %v1311_v19 }
 0x205   :  { %377 = vmatmul.f32.gmra.mxu2 %v1314_v21 }
 0x20d   :  { %380 = vmatmul.f32.gmra.mxu2 %v1317_v22 }
 0x215   :  { %383 = vmatmul.f32.gmra.mxu2 %v1320_v20 }
 0x21d   :  { %386 = vmatmul.f32.gmra.mxu2 %v1323_v17 }
 0x225   :  { %389 = vmatmul.f32.gmra.mxu2 %v1326_v23 }
 0x22d   :  { %392 = vmatmul.f32.gmra.mxu2 %v1329_v24 }
 0x235   :  { %395 = vmatmul.f32.gmra.mxu2 %v1332_v25 }
 0x23d   :  { %398 = vmatmul.f32.gmra.mxu2 %v1335_v26 }
 0x245   :  { %401 = vmatmul.f32.gmra.mxu2 %v1338_v27 }
 0x24d   :  { %404 = vmatmul.f32.gmra.mxu2 %v1341_v28 }
 0x255   :  { %407 = vmatmul.f32.gmra.mxu2 %v1344_v29 }
 0x25d   :  { %410 = vmatmul.f32.gmra.mxu2 %v1347_v32 }
 0x265   :  { %413 = vmatmul.f32.gmra.mxu2 %v1350_v33 }
 0x26d   :  { %416 = vmatmul.f32.gmra.mxu2 %v1353_v35 }
 0x278   :  { %v372_v36 = vpop.f32.mrf.mxu2 }
 0x280   :  { %v375_v38 = vpop.f32.mrf.mxu2 }
 0x288   :  { %v378_v40 = vpop.f32.mrf.mxu2 }
 0x290   :  { %v381_v42 = vpop.f32.mrf.mxu2 }
 0x298   :  { %v384_v44 = vpop.f32.mrf.mxu2 }
 0x2a0   :  { %v387_v47 = vpop.f32.mrf.mxu2 }
 0x2a1   :  { %v425_v17 = vmax.f32 %v387_v47, 0.0  ;;  %v585_v47 = vld [vmem:[#allocation11 + $0x18] sm:$0xff] }
 0x2a8   :  { %v390_v48 = vpop.f32.mrf.mxu2 }
 0x2a9   :  { %v426_v23 = vmax.f32 %v390_v48, 0.0  ;;  %v1467_v48 = vld [vmem:[#allocation24_spill] sm:$0xff] }
 0x2b0   :  { %v393_v49 = vpop.f32.mrf.mxu2 }
 0x2b1   :  { %v427_v24 = vmax.f32 %v393_v49, 0.0  ;;  %v584_v49 = vld [vmem:[#allocation11 + $0x10] sm:$0xff] }
 0x2b8   :  { %v396_v50 = vpop.f32.mrf.mxu2 }
 0x2b9   :  { %v428_v25 = vmax.f32 %v396_v50, 0.0  ;;  %v583_v50 = vld [vmem:[#allocation11 + $0x8] sm:$0xff] }
 0x2c0   :  { %v399_v53 = vpop.f32.mrf.mxu2 }
 0x2c1   :  { %v429_v26 = vmax.f32 %v399_v53, 0.0  ;;  %v1468_v53 = vld [vmem:[#allocation25_spill] sm:$0xff] }
 0x2c8   :  { %v402_v55 = vpop.f32.mrf.mxu2 }
 0x2c9   :  { %v430_v27 = vmax.f32 %v402_v55, 0.0  ;;  %v582_v55 = vld [vmem:[#allocation11] sm:$0xff] }
 0x2d0   :  { %v405_v57 = vpop.f32.mrf.mxu2 }
 0x2d1   :  { %v431_v28 = vmax.f32 %v405_v57, 0.0  ;;  %v1469_v57 = vld [vmem:[#allocation26_spill] sm:$0xff] }
 0x2d8   :  { %v408_v59 = vpop.f32.mrf.mxu2 }
 0x2d9   :  { %v432_v29 = vmax.f32 %v408_v59, 0.0  ;;  %v1470_v59 = vld [vmem:[#allocation27_spill] sm:$0xff] }
 0x2e0   :  { %v411_v61 = vpop.f32.mrf.mxu2 }
 0x2e1   :  { %v433_v35 = vmax.f32 %v411_v61, 0.0  ;;  %v1471_v61 = vld [vmem:[#allocation28_spill] sm:$0xff] }
 0x2e8   :  { %v414_v63 = vpop.f32.mrf.mxu2 }
 0x2e9   :  { %v434_v32 = vmax.f32 %v414_v63, 0.0  ;;  %v424_v63 = vmax.f32 %v384_v44, 0.0  ;;  %v586_v44 = vld [vmem:[#allocation11 + $0x20] sm:$0xff] }
 0x2f0   :  { %v417_v0 = vpop.f32.mrf.mxu2 }
 0x2f1   :  { %v435_v33 = vmax.f32 %v417_v0, 0.0  ;;  %v1472_v0 = vld [vmem:[#allocation29_spill] sm:$0xff] }
 0x2f3   :  { %436 = vmatpush.msrb.mxu3 %v435_v33  ;;  %v423_v33 = vmax.f32 %v381_v42, 0.0  ;;  %v1466_v42 = vld [vmem:[#allocation23_spill] sm:$0xff] }
 0x2f5   :  { %437 = vmatpush.msrb.mxu3 %v434_v32  ;;  %v422_v32 = vmax.f32 %v378_v40, 0.0  ;;  %v587_v40 = vld [vmem:[#allocation11 + $0x28] sm:$0xff] }
 0x2f7   :  { %438 = vmatpush.msrb.mxu3 %v433_v35  ;;  %v421_v35 = vmax.f32 %v375_v38, 0.0  ;;  %v588_v38 = vld [vmem:[#allocation11 + $0x30] sm:$0xff] }
 0x2f9   :  { %439 = vmatpush.msrb.mxu3 %v432_v29  ;;  %v420_v29 = vmax.f32 %v372_v36, 0.0  ;;  %v1465_v36 = vld [vmem:[#allocation22_spill] sm:$0xff] }
 0x2fb   :  { %440 = vmatpush.msrb.mxu3 %v431_v28 }
 0x2fd   :  { %441 = vmatpush.msrb.mxu3 %v430_v27 }
 0x2ff   :  { %442 = vmatpush.msrb.mxu3 %v429_v26 }
 0x301   :  { %443 = vmatpush.msrb.mxu3 %v428_v25 }
 0x303   :  { %444 = vmatpush.msrb.mxu3 %v427_v24 }
 0x305   :  { %445 = vmatpush.msrb.mxu3 %v426_v23 }
 0x307   :  { %446 = vmatpush.msrb.mxu3 %v425_v17 }
 0x309   :  { %447 = vmatpush.msrb.mxu3 %v424_v63 }
 0x30b   :  { %448 = vmatpush.msrb.mxu3 %v423_v33 }
 0x30d   :  { %449 = vmatpush.msrb.mxu3 %v422_v32 }
 0x30f   :  { %450 = vmatpush.msrb.mxu3 %v421_v35 }
 0x311   :  { %451 = vmatpush.msrb.mxu3 %v420_v29 }
 0x312   :  { %452 = vmatmul.f32.vlgmr.msrb.gmra.mxu3 %v1214_v2 }
 0x31a   :  { %455 = vmatmul.f32.gmra.mxu3 %v1220_v4 }
 0x322   :  { %458 = vmatmul.f32.gmra.mxu3 %v1226_v6 }
 0x32a   :  { %461 = vmatmul.f32.gmra.mxu3 %v1232_v8 }
 0x332   :  { %464 = vmatmul.f32.gmra.mxu3 %v1238_v10 }
 0x33a   :  { %467 = vmatmul.f32.gmra.mxu3 %v1244_v12 }
 0x342   :  { %470 = vmatmul.f32.gmra.mxu3 %v1250_v14 }
 0x34a   :  { %473 = vmatmul.f32.gmra.mxu3 %v1256_v16 }
 0x352   :  { %476 = vmatmul.f32.gmra.mxu3 %v1212_v1 }
 0x35a   :  { %479 = vmatmul.f32.gmra.mxu3 %v1218_v3 }
 0x362   :  { %482 = vmatmul.f32.gmra.mxu3 %v1224_v5 }
 0x36a   :  { %485 = vmatmul.f32.gmra.mxu3 %v1230_v7 }
 0x372   :  { %488 = vmatmul.f32.gmra.mxu3 %v1236_v9 }
 0x37a   :  { %491 = vmatmul.f32.gmra.mxu3 %v1242_v11 }
 0x382   :  { %494 = vmatmul.f32.gmra.mxu3 %v1248_v13 }
 0x38a   :  { %497 = vmatmul.f32.gmra.mxu3 %v1254_v15 }
 0x395   :  { %v453_v2 = vpop.f32.mrf.mxu3 }
 0x39d   :  { %v456_v4 = vpop.f32.mrf.mxu3 }
 0x3a5   :  { %v459_v6 = vpop.f32.mrf.mxu3 }
 0x3ad   :  { %v462_v8 = vpop.f32.mrf.mxu3 }
 0x3b5   :  { %v465_v10 = vpop.f32.mrf.mxu3 }
 0x3bd   :  { %v468_v1 = vpop.f32.mrf.mxu3 }
 0x3c5   :  { %v471_v12 = vpop.f32.mrf.mxu3 }
 0x3cd   :  { %v474_v3 = vpop.f32.mrf.mxu3 }
 0x3d5   :  { %v477_v14 = vpop.f32.mrf.mxu3 }
 0x3dd   :  { %v480_v5 = vpop.f32.mrf.mxu3 }
 0x3de   :  { %v510_v28 = vmul.f32 %v480_v5, %v1277_v43  ;;  %v503_v43 = vmul.f32 %v459_v6, %v1298_v58  ;;  %v594_v58 = vld [vmem:[#allocation11 + $0x60] sm:$0xff] }
 0x3e5   :  { %v483_v16 = vpop.f32.mrf.mxu3 }
 0x3e6   :  { %v511_v27 = vmul.f32 %v483_v16, %v1274_v41  ;;  %v504_v41 = vmul.f32 %v462_v8, %v1295_v56  ;;  %v1462_v56 = vld [vmem:[#allocation19_spill] sm:$0xff] }
 0x3ed   :  { %v486_v7 = vpop.f32.mrf.mxu3 }
 0x3ee   :  { %v512_v26 = vmul.f32 %v486_v7, %v1271_v39  ;;  %v505_v39 = vmul.f32 %v465_v10, %v1292_v54  ;;  %v595_v54 = vld [vmem:[#allocation11 + $0x68] sm:$0xff]  ;;  %v1407_v7 = vld [vmem:[%s1438_s7] ss:$0 sm:$0xff]  ;;  %s1127_s7 = smov [#allocation13]  }
 0x3ef   :  { %s880_s12 = sshll.u32 %s1127_s7, 4  ;;  %s881_s12 = int_to_ptr.vmem [resolvable:$true] %s880_s12 }
 0x3f5   :  { %v489_v17 = vpop.f32.mrf.mxu3 }
 0x3f6   :  { %v513_v25 = vmul.f32 %v489_v17, %v1268_v37  ;;  %v506_v37 = vmul.f32 %v468_v1, %v1289_v52  ;;  %v596_v52 = vld [vmem:[#allocation11 + $0x70] sm:$0xff] }
 0x3fd   :  { %v492_v9 = vpop.f32.mrf.mxu3 }
 0x3fe   :  { %v514_v24 = vmul.f32 %v492_v9, %v1265_v34  ;;  %v507_v34 = vmul.f32 %v471_v12, %v1287_v51  ;;  %v597_v51 = vld [vmem:[#allocation11 + $0x78] sm:$0xff] }
 0x3ff   :  { %598 = vmatpush.msrb.mxu1 %v597_v51 }
 0x401   :  { %599 = vmatpush.msrb.mxu1 %v596_v52 }
 0x403   :  { %600 = vmatpush.msrb.mxu1 %v595_v54 }
 0x405   :  { %v495_v23 = vpop.f32.mrf.mxu3  ;;  %601 = vmatpush.msrb.mxu1 %v594_v58 }
 0x406   :  { %v515_v15 = vmul.f32 %v495_v23, %v1262_v31  ;;  %v508_v31 = vmul.f32 %v474_v3, %v1282_v46  ;;  %v501_v46 = vmul.f32 %v453_v2, %v1304_v62  ;;  %v1463_v62 = vld [vmem:[#allocation20_spill] sm:$0xff] }
 0x40d   :  { %v498_v11 = vpop.f32.mrf.mxu3 }
 0x40e   :  { %v516_v13 = vmul.f32 %v498_v11, %v1260_v30  ;;  %v509_v30 = vmul.f32 %v477_v14, %v1280_v45  ;;  %v502_v45 = vmul.f32 %v456_v4, %v1301_v60  ;;  %v593_v60 = vld [vmem:[#allocation11 + $0x58] sm:$0xff] }
 0x40f   :  { %602 = vmatpush.msrb.mxu1 %v593_v60 }
 0x410   :  { %517 = vmatpush.msrb.mxu0 %v516_v13 }
 0x412   :  { %518 = vmatpush.msrb.mxu0 %v515_v15 }
 0x414   :  { %519 = vmatpush.msrb.mxu0 %v514_v24 }
 0x416   :  { %520 = vmatpush.msrb.mxu0 %v513_v25 }
 0x418   :  { %521 = vmatpush.msrb.mxu0 %v512_v26 }
 0x41a   :  { %522 = vmatpush.msrb.mxu0 %v511_v27 }
 0x41c   :  { %523 = vmatpush.msrb.mxu0 %v510_v28 }
 0x41e   :  { %524 = vmatpush.msrb.mxu0 %v509_v30 }
 0x420   :  { %525 = vmatpush.msrb.mxu0 %v508_v31 }
 0x422   :  { %526 = vmatpush.msrb.mxu0 %v507_v34 }
 0x424   :  { %527 = vmatpush.msrb.mxu0 %v506_v37 }
 0x426   :  { %528 = vmatpush.msrb.mxu0 %v505_v39 }
 0x428   :  { %529 = vmatpush.msrb.mxu0 %v504_v41 }
 0x42a   :  { %530 = vmatpush.msrb.mxu0 %v503_v43 }
 0x42c   :  { %531 = vmatpush.msrb.mxu0 %v502_v45 }
 0x42e   :  { %532 = vmatpush.msrb.mxu0 %v501_v46 }
 0x42f   :  { %533 = vmatmul.f32.vlgmr.msrb.gmra.mxu0 %v1308_v18  ;;  %v592_v18 = vld [vmem:[#allocation11 + $0x50] sm:$0xff] }
 0x430   :  { %603 = vmatpush.msrb.mxu1 %v592_v18 }
 0x437   :  { %536 = vmatmul.f32.gmra.mxu0 %v1311_v19  ;;  %v591_v19 = vld [vmem:[#allocation11 + $0x48] sm:$0xff] }
 0x438   :  { %604 = vmatpush.msrb.mxu1 %v591_v19 }
 0x43f   :  { %539 = vmatmul.f32.gmra.mxu0 %v1314_v21  ;;  %v1464_v21 = vld [vmem:[#allocation21_spill] sm:$0xff] }
 0x447   :  { %542 = vmatmul.f32.gmra.mxu0 %v1317_v22  ;;  %v590_v22 = vld [vmem:[#allocation11 + $0x40] sm:$0xff] }
 0x448   :  { %605 = vmatpush.msrb.mxu1 %v590_v22 }
 0x44f   :  { %545 = vmatmul.f32.gmra.mxu0 %v1320_v20  ;;  %v589_v20 = vld [vmem:[#allocation11 + $0x38] sm:$0xff] }
 0x450   :  { %606 = vmatpush.msrb.mxu1 %v589_v20 }
 0x452   :  { %607 = vmatpush.msrb.mxu1 %v588_v38 }
 0x454   :  { %608 = vmatpush.msrb.mxu1 %v587_v40 }
 0x456   :  { %609 = vmatpush.msrb.mxu1 %v586_v44 }
 0x457   :  { %548 = vmatmul.f32.gmra.mxu0 %v1462_v56 }
 0x458   :  { %610 = vmatpush.msrb.mxu1 %v585_v47 }
 0x45a   :  { %611 = vmatpush.msrb.mxu1 %v584_v49 }
 0x45c   :  { %612 = vmatpush.msrb.mxu1 %v583_v50 }
 0x45e   :  { %613 = vmatpush.msrb.mxu1 %v582_v55 }
 0x45f   :  { %551 = vmatmul.f32.gmra.mxu0 %v1463_v62 }
 0x467   :  { %554 = vmatmul.f32.gmra.mxu0 %v1464_v21 }
 0x46f   :  { %557 = vmatmul.f32.gmra.mxu0 %v1465_v36 }
 0x477   :  { %560 = vmatmul.f32.gmra.mxu0 %v1466_v42 }
 0x47f   :  { %563 = vmatmul.f32.gmra.mxu0 %v1467_v48 }
 0x487   :  { %566 = vmatmul.f32.gmra.mxu0 %v1468_v53 }
 0x48f   :  { %569 = vmatmul.f32.gmra.mxu0 %v1469_v57 }
 0x497   :  { %572 = vmatmul.f32.gmra.mxu0 %v1470_v59 }
 0x49f   :  { %575 = vmatmul.f32.gmra.mxu0 %v1471_v61 }
 0x4a7   :  { %578 = vmatmul.f32.gmra.mxu0 %v1472_v0 }
 0x4ac   :  { %v534_v63 = vpop.f32.mrf.mxu0 }
 0x4ad   :  { %614 = vmatmul.f32.vlgmr.msrb.gmra.mxu1 %v534_v63 }
 0x4b4   :  { %v537_v33 = vpop.f32.mrf.mxu0 }
 0x4b5   :  { %617 = vmatmul.f32.gmra.mxu1 %v537_v33 }
 0x4bc   :  { %v540_v32 = vpop.f32.mrf.mxu0 }
 0x4bd   :  { %620 = vmatmul.f32.gmra.mxu1 %v540_v32 }
 0x4c4   :  { %v543_v35 = vpop.f32.mrf.mxu0 }
 0x4c5   :  { %623 = vmatmul.f32.gmra.mxu1 %v543_v35 }
 0x4cc   :  { %v546_v29 = vpop.f32.mrf.mxu0 }
 0x4cd   :  { %626 = vmatmul.f32.gmra.mxu1 %v546_v29 }
 0x4d4   :  { %v549_v2 = vpop.f32.mrf.mxu0 }
 0x4d5   :  { %629 = vmatmul.f32.gmra.mxu1 %v549_v2 }
 0x4dc   :  { %v552_v4 = vpop.f32.mrf.mxu0 }
 0x4dd   :  { %632 = vmatmul.f32.gmra.mxu1 %v552_v4 }
 0x4e4   :  { %v555_v6 = vpop.f32.mrf.mxu0 }
 0x4e5   :  { %635 = vmatmul.f32.gmra.mxu1 %v555_v6 }
 0x4ec   :  { %v558_v8 = vpop.f32.mrf.mxu0 }
 0x4ed   :  { %638 = vmatmul.f32.gmra.mxu1 %v558_v8 }
 0x4f4   :  { %v561_v10 = vpop.f32.mrf.mxu0 }
 0x4f5   :  { %641 = vmatmul.f32.gmra.mxu1 %v561_v10 }
 0x4fc   :  { %v564_v1 = vpop.f32.mrf.mxu0 }
 0x4fd   :  { %644 = vmatmul.f32.gmra.mxu1 %v564_v1 }
 0x504   :  { %v567_v12 = vpop.f32.mrf.mxu0 }
 0x505   :  { %647 = vmatmul.f32.gmra.mxu1 %v567_v12 }
 0x50c   :  { %v570_v3 = vpop.f32.mrf.mxu0 }
 0x50d   :  { %650 = vmatmul.f32.gmra.mxu1 %v570_v3 }
 0x514   :  { %v573_v14 = vpop.f32.mrf.mxu0 }
 0x515   :  { %653 = vmatmul.f32.gmra.mxu1 %v573_v14 }
 0x51c   :  { %v576_v5 = vpop.f32.mrf.mxu0 }
 0x51d   :  { %656 = vmatmul.f32.gmra.mxu1 %v576_v5 }
 0x524   :  { %v579_v16 = vpop.f32.mrf.mxu0 }
 0x525   :  { %659 = vmatmul.f32.gmra.mxu1 %v579_v16 }
 0x52a   :  { %v615_v17 = vpop.f32.mrf.mxu1 }
 0x52b   :  { %v670_v9 = vadd.f32 %v1407_v7, %v615_v17 }
 0x52d   :  { %v686_v23 = vmax.f32 %v670_v9, 0.0 }
 0x52f   :  { %702 = vst [vmem:[#allocation13] sm:$0xff] %v686_v23 }
 0x532   :  { %v618_v11 = vpop.f32.mrf.mxu1 }
 0x533   :  { %v671_v13 = vadd.f32 %v1407_v7, %v618_v11 }
 0x535   :  { %v687_v15 = vmax.f32 %v671_v13, 0.0 }
 0x537   :  { %703 = vst [vmem:[#allocation13 + $0x8] sm:$0xff] %v687_v15 }
 0x53a   :  { %v621_v24 = vpop.f32.mrf.mxu1 }
 0x53b   :  { %v672_v25 = vadd.f32 %v1407_v7, %v621_v24 }
 0x53d   :  { %v688_v26 = vmax.f32 %v672_v25, 0.0 }
 0x53f   :  { %704 = vst [vmem:[#allocation13 + $0x10] sm:$0xff] %v688_v26 }
 0x542   :  { %v624_v27 = vpop.f32.mrf.mxu1 }
 0x543   :  { %v673_v28 = vadd.f32 %v1407_v7, %v624_v27 }
 0x545   :  { %v689_v30 = vmax.f32 %v673_v28, 0.0 }
 0x547   :  { %705 = vst [vmem:[#allocation13 + $0x18] sm:$0xff] %v689_v30 }
 0x54a   :  { %v627_v31 = vpop.f32.mrf.mxu1 }
 0x54b   :  { %v674_v34 = vadd.f32 %v1407_v7, %v627_v31 }
 0x54d   :  { %v690_v37 = vmax.f32 %v674_v34, 0.0 }
 0x54f   :  { %706 = vst [vmem:[#allocation13 + $0x20] sm:$0xff] %v690_v37 }
 0x552   :  { %v630_v39 = vpop.f32.mrf.mxu1 }
 0x553   :  { %v675_v41 = vadd.f32 %v1407_v7, %v630_v39 }
 0x555   :  { %v691_v43 = vmax.f32 %v675_v41, 0.0 }
 0x557   :  { %707 = vst [vmem:[#allocation13 + $0x28] sm:$0xff] %v691_v43 }
 0x55a   :  { %v633_v45 = vpop.f32.mrf.mxu1 }
 0x55b   :  { %v676_v46 = vadd.f32 %v1407_v7, %v633_v45 }
 0x55d   :  { %v692_v51 = vmax.f32 %v676_v46, 0.0 }
 0x55f   :  { %708 = vst [vmem:[#allocation13 + $0x30] sm:$0xff] %v692_v51 }
 0x562   :  { %v636_v52 = vpop.f32.mrf.mxu1 }
 0x563   :  { %v677_v54 = vadd.f32 %v1407_v7, %v636_v52 }
 0x565   :  { %v693_v56 = vmax.f32 %v677_v54, 0.0 }
 0x567   :  { %709 = vst [vmem:[#allocation13 + $0x38] sm:$0xff] %v693_v56 }
 0x56a   :  { %v639_v58 = vpop.f32.mrf.mxu1 }
 0x56b   :  { %v678_v60 = vadd.f32 %v1407_v7, %v639_v58 }
 0x56d   :  { %v694_v62 = vmax.f32 %v678_v60, 0.0 }
 0x56f   :  { %710 = vst [vmem:[#allocation13 + $0x40] sm:$0xff] %v694_v62 }
 0x572   :  { %v642_v18 = vpop.f32.mrf.mxu1 }
 0x573   :  { %v679_v19 = vadd.f32 %v1407_v7, %v642_v18 }
 0x575   :  { %v695_v21 = vmax.f32 %v679_v19, 0.0 }
 0x577   :  { %711 = vst [vmem:[#allocation13 + $0x48] sm:$0xff] %v695_v21 }
 0x57a   :  { %v645_v22 = vpop.f32.mrf.mxu1 }
 0x57b   :  { %v680_v20 = vadd.f32 %v1407_v7, %v645_v22 }
 0x57d   :  { %v696_v36 = vmax.f32 %v680_v20, 0.0 }
 0x57f   :  { %712 = vst [vmem:[#allocation13 + $0x50] sm:$0xff] %v696_v36 }
 0x582   :  { %v648_v38 = vpop.f32.mrf.mxu1 }
 0x583   :  { %v681_v40 = vadd.f32 %v1407_v7, %v648_v38 }
 0x585   :  { %v697_v42 = vmax.f32 %v681_v40, 0.0 }
 0x587   :  { %713 = vst [vmem:[#allocation13 + $0x58] sm:$0xff] %v697_v42 }
 0x58a   :  { %v651_v44 = vpop.f32.mrf.mxu1 }
 0x58b   :  { %v682_v47 = vadd.f32 %v1407_v7, %v651_v44 }
 0x58d   :  { %v698_v48 = vmax.f32 %v682_v47, 0.0 }
 0x58f   :  { %714 = vst [vmem:[#allocation13 + $0x60] sm:$0xff] %v698_v48 }
 0x592   :  { %v654_v49 = vpop.f32.mrf.mxu1 }
 0x593   :  { %v683_v50 = vadd.f32 %v1407_v7, %v654_v49 }
 0x595   :  { %v699_v53 = vmax.f32 %v683_v50, 0.0 }
 0x597   :  { %715 = vst [vmem:[#allocation13 + $0x68] sm:$0xff] %v699_v53 }
 0x59a   :  { %v657_v55 = vpop.f32.mrf.mxu1 }
 0x59b   :  { %v684_v57 = vadd.f32 %v1407_v7, %v657_v55 }
 0x59d   :  { %v700_v59 = vmax.f32 %v684_v57, 0.0 }
 0x59f   :  { %716 = vst [vmem:[#allocation13 + $0x70] sm:$0xff] %v700_v59 }
 0x5a2   :  { %v660_v61 = vpop.f32.mrf.mxu1 }
 0x5a3   :  { %v685_v0 = vadd.f32 %v1407_v7, %v660_v61 }
 0x5a5   :  { %v701_v63 = vmax.f32 %v685_v0, 0.0 }
 0x5a7   :  { %717 = vst [vmem:[#allocation13 + $0x78] sm:$0xff] %v701_v63 }
 0x5a8   :  { %888 = dma.vmem_to_hbm [thread:$0]  %s881_s12, 2048, %s883_s17, [#allocation4], %s1120_s13, %s1120_s13, %s1121_s14  }
 0x5a9   :  { %1117 = dma.done.wait [#allocation4], 2048  }
 0x5aa   :  { %1118 = vsyncadd [#allocation4], 4294965248 }
 0x5ab   :  { %893 = vsyncpa [#allocation3], 1 }
 0x5ac   :  { %894 = vsyncpa [#allocation6], 1 }
 0x5ad   :  { %895 = vsyncpa [#allocation9], 1 }
 0x5ae   :  { %896 = vsyncpa [#allocation12], 1 }
 0x5af   :  { %897 = vsyncpa [#allocation4], 1 }

// kernel: tpu_custom_call.1
= control target key start
LH: loop header
LB: loop body
LE: loop exit
PB: predicated region body
PF: predicated region fallthrough
CT: control target
= control target key end

     0   :  { %13 = vsyncpa [#allocation3], 0  ;;  %s1431_s0 = inlined_call_operand.hbm [shape: f32[128,128], index: 0, kind: input, shape index: {}]   ;;  %s1432_s1 = inlined_call_operand.hbm [shape: f32[128,128], index: 1, kind: input, shape index: {}]   ;;  %s1433_s2 = inlined_call_operand.hbm [shape: f32[128,128], index: 2, kind: input, shape index: {}]   ;;  %s1434_s3 = inlined_call_operand.hbm [shape: f32[128,128], index: 3, kind: input, shape index: {}]   ;;  %s1435_s4 = inlined_call_operand.hbm [shape: f32[128,128], index: 4, kind: input, shape index: {}]   ;;  %s1436_s5 = inlined_call_operand.vmem [shape: f32[1,128], index: 5, kind: input, shape index: {}]   ;;  %s1437_s6 = inlined_call_operand.hbm [shape: f32[128,128], index: 6, kind: input, shape index: {}]   ;;  %s1438_s7 = inlined_call_operand.vmem [shape: f32[1,128], index: 7, kind: input, shape index: {}]   ;;  %s1439_s8 = inlined_call_operand.hbm [shape: f32[128,128], index: 8, kind: output, shape index: {}]  }
   0x1   :  { %14 = vsyncpa [#allocation6], 0 }
   0x2   :  { %15 = vsyncpa [#allocation9], 0 }
   0x3   :  { %16 = vsyncpa [#allocation12], 0 }
   0x4   :  { %17 = vsyncpa [#allocation4], 0  ;;  %s35_s29 = sshll.u32 %s1432_s1, 4  ;;  %s1119_s30 = smov [#allocation5]   ;;  %s36_s29 = int_to_ptr.hbm [resolvable:$true] %s35_s29 }
   0x5   :  { %s37_s9 = sshll.u32 %s1119_s30, 4  ;;  %s61_s12 = sshll.u32 %s1434_s3, 4  ;;  %s38_s9 = int_to_ptr.vmem [resolvable:$true] %s37_s9  ;;  %s62_s12 = int_to_ptr.hbm [resolvable:$true] %s61_s12 }
   0x6   :  { %s1120_s13 = smov 128   ;;  %s1121_s14 = smov 8  }
   0x7   :  { %43 = dma.hbm_to_vmem [thread:$0]  %s36_s29, 2048, %s38_s9, [#allocation6], %s1120_s13, %s1120_s13, %s1121_s14  }
   0x8   :  { %s1122_s15 = smov [#allocation8]   ;;  %s22_s1 = sshll.u32 %s1431_s0, 4  ;;  %s23_s1 = int_to_ptr.hbm [resolvable:$true] %s22_s1 }
   0x9   :  { %s63_s16 = sshll.u32 %s1122_s15, 4  ;;  %s48_s20 = sshll.u32 %s1433_s2, 4  ;;  %s64_s16 = int_to_ptr.vmem [resolvable:$true] %s63_s16  ;;  %s49_s20 = int_to_ptr.hbm [resolvable:$true] %s48_s20 }
   0xa   :  { %69 = dma.hbm_to_vmem [thread:$0]  %s62_s12, 2048, %s64_s16, [#allocation9], %s1120_s13, %s1120_s13, %s1121_s14  }
   0xb   :  { %s1123_s21 = smov [#allocation2]   ;;  %s1124_s23 = smov [#allocation7]  }
   0xc   :  { %s24_s22 = sshll.u32 %s1123_s21, 4  ;;  %s50_s0 = sshll.u32 %s1124_s23, 4  ;;  %s25_s22 = int_to_ptr.vmem [resolvable:$true] %s24_s22  ;;  %s51_s0 = int_to_ptr.vmem [resolvable:$true] %s50_s0 }
   0xd   :  { %30 = dma.hbm_to_vmem [thread:$0]  %s23_s1, 2048, %s25_s22, [#allocation3], %s1120_s13, %s1120_s13, %s1121_s14  }
   0xe   :  { %s74_s26 = sshll.u32 %s1435_s4, 4  ;;  %s89_s28 = sshll.u32 %s1437_s6, 4  ;;  %s75_s26 = int_to_ptr.hbm [resolvable:$true] %s74_s26  ;;  %s90_s28 = int_to_ptr.hbm [resolvable:$true] %s89_s28 }
   0xf   :  { %56 = dma.hbm_to_vmem [thread:$0]  %s49_s20, 2048, %s51_s0, [#allocation6], %s1120_s13, %s1120_s13, %s1121_s14  }
  0x10   :  { %s1125_s29 = smov [#allocation10]   ;;  %s1126_s9 = smov [#allocation11]  }
  0x11   :  { %s76_s30 = sshll.u32 %s1125_s29, 4  ;;  %s91_s4 = sshll.u32 %s1126_s9, 4  ;;  %s77_s30 = int_to_ptr.vmem [resolvable:$true] %s76_s30  ;;  %s92_s4 = int_to_ptr.vmem [resolvable:$true] %s91_s4 }
  0x12   :  { %82 = dma.hbm_to_vmem [thread:$0]  %s75_s26, 2048, %s77_s30, [#allocation9], %s1120_s13, %s1120_s13, %s1121_s14  }
  0x13   :  { %97 = dma.hbm_to_vmem [thread:$0]  %s90_s28, 2048, %s92_s4, [#allocation12], %s1120_s13, %s1120_s13, %s1121_s14  }
  0x14   :  { %1109 = dma.done.wait [#allocation3], 2048  }
  0x15   :  { %1110 = vsyncadd [#allocation3], 4294965248 }
  0x16   :  { %1111 = dma.done.wait [#allocation6], 4096  }
  0x17   :  { %1112 = vsyncadd [#allocation6], 4294963200 }
  0x18   :  { %1113 = dma.done.wait [#allocation9], 4096  }
  0x19   :  { %1114 = vsyncadd [#allocation9], 4294963200 }
  0x1a   :  { %1115 = dma.done.wait [#allocation12], 2048  }
  0x1b   :  { %1116 = vsyncadd [#allocation12], 4294965248  ;;  %v204_v0 = vld [vmem:[#allocation10 + $0x78] sm:$0xff]  ;;  %v203_v1 = vld [vmem:[#allocation10 + $0x70] sm:$0xff]  ;;  %s882_s17 = sshll.u32 %s1439_s8, 4  ;;  %s883_s17 = int_to_ptr.hbm [resolvable:$true] %s882_s17 }
  0x1c   :  { %898 = vmatpush.msra.mxu2 %v204_v0  ;;  %209 = vmatpush.msra.mxu0 %v204_v0  ;;  %v202_v2 = vld [vmem:[#allocation10 + $0x68] sm:$0xff]  ;;  %v201_v3 = vld [vmem:[#allocation10 + $0x60] sm:$0xff]  ;;  %v200_v4 = vld [vmem:[#allocation10 + $0x58] sm:$0xff] }
  0x1d   :  { %v199_v5 = vld [vmem:[#allocation10 + $0x50] sm:$0xff]  ;;  %v198_v6 = vld [vmem:[#allocation10 + $0x48] sm:$0xff]  ;;  %v197_v7 = vld [vmem:[#allocation10 + $0x40] sm:$0xff] }
  0x1e   :  { %899 = vmatpush.msra.mxu2 %v203_v1  ;;  %210 = vmatpush.msra.mxu0 %v203_v1  ;;  %v196_v8 = vld [vmem:[#allocation10 + $0x38] sm:$0xff]  ;;  %v195_v9 = vld [vmem:[#allocation10 + $0x30] sm:$0xff]  ;;  %v194_v10 = vld [vmem:[#allocation10 + $0x28] sm:$0xff] }
  0x1f   :  { %v193_v11 = vld [vmem:[#allocation10 + $0x20] sm:$0xff]  ;;  %v192_v12 = vld [vmem:[#allocation10 + $0x18] sm:$0xff]  ;;  %v191_v13 = vld [vmem:[#allocation10 + $0x10] sm:$0xff] }
  0x20   :  { %900 = vmatpush.msra.mxu2 %v202_v2  ;;  %211 = vmatpush.msra.mxu0 %v202_v2  ;;  %v190_v14 = vld [vmem:[#allocation10 + $0x8] sm:$0xff]  ;;  %v189_v15 = vld [vmem:[#allocation10] sm:$0xff]  ;;  %v135_v20 = vld [vmem:[#allocation2 + $0x50] sm:$0xff] }
  0x21   :  { %v133_v16 = vld [vmem:[#allocation2 + $0x40] sm:$0xff]  ;;  %v134_v18 = vld [vmem:[#allocation2 + $0x48] sm:$0xff]  ;;  %v127_v21 = vld [vmem:[#allocation2 + $0x10] sm:$0xff] }
  0x22   :  { %901 = vmatpush.msra.mxu2 %v201_v3  ;;  %212 = vmatpush.msra.mxu0 %v201_v3  ;;  %v125_v17 = vld [vmem:[#allocation2] sm:$0xff]  ;;  %v126_v19 = vld [vmem:[#allocation2 + $0x8] sm:$0xff]  ;;  %v136_v22 = vld [vmem:[#allocation2 + $0x58] sm:$0xff] }
  0x23   :  { %v128_v23 = vld [vmem:[#allocation2 + $0x18] sm:$0xff]  ;;  %v137_v24 = vld [vmem:[#allocation2 + $0x60] sm:$0xff]  ;;  %v138_v26 = vld [vmem:[#allocation2 + $0x68] sm:$0xff] }
  0x24   :  { %902 = vmatpush.msra.mxu2 %v200_v4  ;;  %213 = vmatpush.msra.mxu0 %v200_v4  ;;  %v129_v25 = vld [vmem:[#allocation2 + $0x20] sm:$0xff]  ;;  %v130_v27 = vld [vmem:[#allocation2 + $0x28] sm:$0xff]  ;;  %v139_v28 = vld [vmem:[#allocation2 + $0x70] sm:$0xff] }
  0x25   :  { %v131_v29 = vld [vmem:[#allocation2 + $0x30] sm:$0xff]  ;;  %v140_v30 = vld [vmem:[#allocation2 + $0x78] sm:$0xff]  ;;  %v939_v45 = vld [vmem:[%s1436_s5] ss:$0 sm:$0xff] }
  0x26   :  { %903 = vmatpush.msra.mxu2 %v199_v5  ;;  %214 = vmatpush.msra.mxu0 %v199_v5  ;;  %v132_v31 = vld [vmem:[#allocation2 + $0x38] sm:$0xff]  ;;  %v1212_v1 = vld [vmem:[#allocation7 + $0x40] sm:$0xff]  ;;  %v1218_v3 = vld [vmem:[#allocation7 + $0x48] sm:$0xff] }
  0x27   :  { %v1214_v2 = vld [vmem:[#allocation7] sm:$0xff]  ;;  %v1220_v4 = vld [vmem:[#allocation7 + $0x8] sm:$0xff]  ;;  %v1224_v5 = vld [vmem:[#allocation7 + $0x50] sm:$0xff] }
  0x28   :  { %904 = vmatpush.msra.mxu2 %v198_v6  ;;  %215 = vmatpush.msra.mxu0 %v198_v6  ;;  %v1226_v6 = vld [vmem:[#allocation7 + $0x10] sm:$0xff] }
  0x2a   :  { %905 = vmatpush.msra.mxu2 %v197_v7  ;;  %216 = vmatpush.msra.mxu0 %v197_v7  ;;  %v1230_v7 = vld [vmem:[#allocation7 + $0x58] sm:$0xff] }
  0x2c   :  { %906 = vmatpush.msra.mxu2 %v196_v8  ;;  %217 = vmatpush.msra.mxu0 %v196_v8  ;;  %v1232_v8 = vld [vmem:[#allocation7 + $0x18] sm:$0xff] }
  0x2e   :  { %907 = vmatpush.msra.mxu2 %v195_v9  ;;  %218 = vmatpush.msra.mxu0 %v195_v9  ;;  %v1236_v9 = vld [vmem:[#allocation7 + $0x60] sm:$0xff] }
  0x30   :  { %908 = vmatpush.msra.mxu2 %v194_v10  ;;  %219 = vmatpush.msra.mxu0 %v194_v10  ;;  %v1238_v10 = vld [vmem:[#allocation7 + $0x20] sm:$0xff] }
  0x32   :  { %909 = vmatpush.msra.mxu2 %v193_v11  ;;  %220 = vmatpush.msra.mxu0 %v193_v11  ;;  %v1242_v11 = vld [vmem:[#allocation7 + $0x68] sm:$0xff] }
  0x34   :  { %910 = vmatpush.msra.mxu2 %v192_v12  ;;  %221 = vmatpush.msra.mxu0 %v192_v12  ;;  %v1244_v12 = vld [vmem:[#allocation7 + $0x28] sm:$0xff] }
  0x36   :  { %911 = vmatpush.msra.mxu2 %v191_v13  ;;  %222 = vmatpush.msra.mxu0 %v191_v13  ;;  %v1248_v13 = vld [vmem:[#allocation7 + $0x70] sm:$0xff] }
  0x38   :  { %912 = vmatpush.msra.mxu2 %v190_v14  ;;  %223 = vmatpush.msra.mxu0 %v190_v14  ;;  %v1250_v14 = vld [vmem:[#allocation7 + $0x30] sm:$0xff] }
  0x3a   :  { %913 = vmatpush.msra.mxu2 %v189_v15  ;;  %224 = vmatpush.msra.mxu0 %v189_v15  ;;  %v1254_v15 = vld [vmem:[#allocation7 + $0x78] sm:$0xff] }
  0x3b   :  { %249 = vmatmul.f32.vlgmr.msra.gmra.mxu2 %v133_v16  ;;  %225 = vmatmul.f32.vlgmr.msra.gmra.mxu0 %v125_v17  ;;  %v1256_v16 = vld [vmem:[#allocation7 + $0x38] sm:$0xff] }
  0x43   :  { %252 = vmatmul.f32.gmra.mxu2 %v134_v18  ;;  %228 = vmatmul.f32.gmra.mxu0 %v126_v19 }
  0x4b   :  { %255 = vmatmul.f32.gmra.mxu2 %v135_v20  ;;  %231 = vmatmul.f32.gmra.mxu0 %v127_v21 }
  0x53   :  { %258 = vmatmul.f32.gmra.mxu2 %v136_v22  ;;  %234 = vmatmul.f32.gmra.mxu0 %v128_v23 }
  0x5b   :  { %261 = vmatmul.f32.gmra.mxu2 %v137_v24  ;;  %237 = vmatmul.f32.gmra.mxu0 %v129_v25 }
  0x63   :  { %264 = vmatmul.f32.gmra.mxu2 %v138_v26  ;;  %240 = vmatmul.f32.gmra.mxu0 %v130_v27 }
  0x6b   :  { %267 = vmatmul.f32.gmra.mxu2 %v139_v28  ;;  %243 = vmatmul.f32.gmra.mxu0 %v131_v29 }
  0x73   :  { %270 = vmatmul.f32.gmra.mxu2 %v140_v30  ;;  %246 = vmatmul.f32.gmra.mxu0 %v132_v31  ;;  %v1260_v30 = vld [vmem:[#allocation8 + $0x78] sm:$0xff]  ;;  %v1262_v31 = vld [vmem:[#allocation8 + $0x70] sm:$0xff] }
  0xb8   :  { %v226_v32 = vpop.f32.mrf.mxu0 }
  0xb9   :  { %v227_v0 = vadd.f32 %v939_v45, %v226_v32 }
  0xbe   :  { %v250_v33 = vpop.f32.mrf.mxu2 }
  0xbf   :  { %v251_v56 = vadd.f32 %v939_v45, %v250_v33 }
  0xc0   :  { %v229_v35 = vpop.f32.mrf.mxu0 }
  0xc1   :  { %v230_v63 = vadd.f32 %v939_v45, %v229_v35 }
  0xc6   :  { %v253_v34 = vpop.f32.mrf.mxu2 }
  0xc7   :  { %v254_v55 = vadd.f32 %v939_v45, %v253_v34  ;;  %v1265_v34 = vld [vmem:[#allocation8 + $0x68] sm:$0xff] }
  0xc8   :  { %v232_v37 = vpop.f32.mrf.mxu0 }
  0xc9   :  { %v233_v62 = vadd.f32 %v939_v45, %v232_v37  ;;  %v1268_v37 = vld [vmem:[#allocation8 + $0x60] sm:$0xff] }
  0xce   :  { %v256_v36 = vpop.f32.mrf.mxu2 }
  0xcf   :  { %v257_v53 = vadd.f32 %v939_v45, %v256_v36 }
  0xd0   :  { %v235_v39 = vpop.f32.mrf.mxu0 }
  0xd1   :  { %v236_v61 = vadd.f32 %v939_v45, %v235_v39  ;;  %v1271_v39 = vld [vmem:[#allocation8 + $0x58] sm:$0xff] }
  0xd6   :  { %v259_v38 = vpop.f32.mrf.mxu2 }
  0xd7   :  { %v260_v52 = vadd.f32 %v939_v45, %v259_v38 }
  0xd8   :  { %v238_v41 = vpop.f32.mrf.mxu0 }
  0xd9   :  { %v239_v60 = vadd.f32 %v939_v45, %v238_v41  ;;  %v1274_v41 = vld [vmem:[#allocation8 + $0x50] sm:$0xff] }
  0xde   :  { %v262_v40 = vpop.f32.mrf.mxu2 }
  0xdf   :  { %v263_v51 = vadd.f32 %v939_v45, %v262_v40 }
  0xe0   :  { %v241_v44 = vpop.f32.mrf.mxu0 }
  0xe1   :  { %v242_v59 = vadd.f32 %v939_v45, %v241_v44 }
  0xe6   :  { %v265_v42 = vpop.f32.mrf.mxu2 }
  0xe7   :  { %v266_v50 = vadd.f32 %v939_v45, %v265_v42 }
  0xe8   :  { %v244_v48 = vpop.f32.mrf.mxu0 }
  0xe9   :  { %v245_v58 = vadd.f32 %v939_v45, %v244_v48 }
  0xee   :  { %v268_v43 = vpop.f32.mrf.mxu2 }
  0xef   :  { %v269_v49 = vadd.f32 %v939_v45, %v268_v43  ;;  %v1277_v43 = vld [vmem:[#allocation8 + $0x48] sm:$0xff] }
  0xf0   :  { %v247_v54 = vpop.f32.mrf.mxu0 }
  0xf1   :  { %v248_v57 = vadd.f32 %v939_v45, %v247_v54  ;;  %v1292_v54 = vld [vmem:[#allocation8 + $0x20] sm:$0xff] }
  0xf6   :  { %v271_v46 = vpop.f32.mrf.mxu2 }
  0xf7   :  { %v272_v47 = vadd.f32 %v939_v45, %v271_v46  ;;  %v1280_v45 = vld [vmem:[#allocation8 + $0x40] sm:$0xff]  ;;  %v1282_v46 = vld [vmem:[#allocation8 + $0x38] sm:$0xff] }
  0xf9   :  { %274 = vmatpush.msra.mxu1 %v272_v47  ;;  %914 = vmatpush.msra.mxu3 %v272_v47 }
  0xfb   :  { %275 = vmatpush.msra.mxu1 %v269_v49  ;;  %915 = vmatpush.msra.mxu3 %v269_v49 }
  0xfd   :  { %276 = vmatpush.msra.mxu1 %v266_v50  ;;  %916 = vmatpush.msra.mxu3 %v266_v50 }
  0xff   :  { %277 = vmatpush.msra.mxu1 %v263_v51  ;;  %917 = vmatpush.msra.mxu3 %v263_v51  ;;  %v1287_v51 = vld [vmem:[#allocation8 + $0x30] sm:$0xff] }
 0x101   :  { %278 = vmatpush.msra.mxu1 %v260_v52  ;;  %918 = vmatpush.msra.mxu3 %v260_v52  ;;  %v1289_v52 = vld [vmem:[#allocation8 + $0x28] sm:$0xff] }
 0x103   :  { %279 = vmatpush.msra.mxu1 %v257_v53  ;;  %919 = vmatpush.msra.mxu3 %v257_v53 }
 0x105   :  { %280 = vmatpush.msra.mxu1 %v254_v55  ;;  %920 = vmatpush.msra.mxu3 %v254_v55 }
 0x107   :  { %281 = vmatpush.msra.mxu1 %v251_v56  ;;  %921 = vmatpush.msra.mxu3 %v251_v56  ;;  %v1295_v56 = vld [vmem:[#allocation8 + $0x18] sm:$0xff] }
 0x109   :  { %282 = vmatpush.msra.mxu1 %v248_v57  ;;  %922 = vmatpush.msra.mxu3 %v248_v57 }
 0x10b   :  { %283 = vmatpush.msra.mxu1 %v245_v58  ;;  %923 = vmatpush.msra.mxu3 %v245_v58  ;;  %v1298_v58 = vld [vmem:[#allocation8 + $0x10] sm:$0xff] }
 0x10d   :  { %284 = vmatpush.msra.mxu1 %v242_v59  ;;  %924 = vmatpush.msra.mxu3 %v242_v59 }
 0x10f   :  { %285 = vmatpush.msra.mxu1 %v239_v60  ;;  %925 = vmatpush.msra.mxu3 %v239_v60  ;;  %v1301_v60 = vld [vmem:[#allocation8 + $0x8] sm:$0xff] }
 0x111   :  { %286 = vmatpush.msra.mxu1 %v236_v61  ;;  %926 = vmatpush.msra.mxu3 %v236_v61 }
 0x113   :  { %287 = vmatpush.msra.mxu1 %v233_v62  ;;  %927 = vmatpush.msra.mxu3 %v233_v62  ;;  %v1304_v62 = vld [vmem:[#allocation8] sm:$0xff] }
 0x115   :  { %288 = vmatpush.msra.mxu1 %v230_v63  ;;  %928 = vmatpush.msra.mxu3 %v230_v63 }
 0x117   :  { %289 = vmatpush.msra.mxu1 %v227_v0  ;;  %929 = vmatpush.msra.mxu3 %v227_v0 }
 0x118   :  { %314 = vmatmul.f32.vlgmr.msra.gmra.mxu3 %v1212_v1  ;;  %290 = vmatmul.f32.vlgmr.msra.gmra.mxu1 %v1214_v2 }
 0x120   :  { %317 = vmatmul.f32.gmra.mxu3 %v1218_v3  ;;  %293 = vmatmul.f32.gmra.mxu1 %v1220_v4 }
 0x128   :  { %320 = vmatmul.f32.gmra.mxu3 %v1224_v5  ;;  %296 = vmatmul.f32.gmra.mxu1 %v1226_v6 }
 0x130   :  { %323 = vmatmul.f32.gmra.mxu3 %v1230_v7  ;;  %299 = vmatmul.f32.gmra.mxu1 %v1232_v8 }
 0x138   :  { %326 = vmatmul.f32.gmra.mxu3 %v1236_v9  ;;  %302 = vmatmul.f32.gmra.mxu1 %v1238_v10 }
 0x140   :  { %329 = vmatmul.f32.gmra.mxu3 %v1242_v11  ;;  %305 = vmatmul.f32.gmra.mxu1 %v1244_v12 }
 0x148   :  { %332 = vmatmul.f32.gmra.mxu3 %v1248_v13  ;;  %308 = vmatmul.f32.gmra.mxu1 %v1250_v14 }
 0x150   :  { %335 = vmatmul.f32.gmra.mxu3 %v1254_v15  ;;  %311 = vmatmul.f32.gmra.mxu1 %v1256_v16 }
 0x195   :  { %v291_v17 = vpop.f32.mrf.mxu1 }
 0x196   :  { %v339_v0 = vmul.f32 %v291_v17, %v1304_v62  ;;  %v1323_v17 = vld [vmem:[#allocation5 + $0x28] sm:$0xff] }
 0x197   :  { %1451 = vst [vmem:[#allocation19_spill] sm:$0xff] %v1323_v17 }
 0x19b   :  { %v315_v18 = vpop.f32.mrf.mxu3 }
 0x19c   :  { %v347_v49 = vmul.f32 %v315_v18, %v1280_v45  ;;  %v1308_v18 = vld [vmem:[#allocation5] sm:$0xff] }
 0x19d   :  { %v294_v20 = vpop.f32.mrf.mxu1 }
 0x19e   :  { %v340_v63 = vmul.f32 %v294_v20, %v1301_v60  ;;  %v1320_v20 = vld [vmem:[#allocation5 + $0x20] sm:$0xff] }
 0x1a3   :  { %v318_v19 = vpop.f32.mrf.mxu3 }
 0x1a4   :  { %v348_v48 = vmul.f32 %v318_v19, %v1277_v43  ;;  %v1311_v19 = vld [vmem:[#allocation5 + $0x8] sm:$0xff] }
 0x1a5   :  { %v297_v22 = vpop.f32.mrf.mxu1 }
 0x1a6   :  { %v341_v61 = vmul.f32 %v297_v22, %v1298_v58  ;;  %v1317_v22 = vld [vmem:[#allocation5 + $0x18] sm:$0xff] }
 0x1ab   :  { %v321_v21 = vpop.f32.mrf.mxu3 }
 0x1ac   :  { %v349_v44 = vmul.f32 %v321_v21, %v1274_v41  ;;  %v1314_v21 = vld [vmem:[#allocation5 + $0x10] sm:$0xff] }
 0x1ad   :  { %v300_v24 = vpop.f32.mrf.mxu1 }
 0x1ae   :  { %v342_v59 = vmul.f32 %v300_v24, %v1295_v56  ;;  %v1329_v24 = vld [vmem:[#allocation5 + $0x38] sm:$0xff] }
 0x1af   :  { %1453 = vst [vmem:[#allocation21_spill] sm:$0xff] %v1329_v24 }
 0x1b3   :  { %v324_v23 = vpop.f32.mrf.mxu3 }
 0x1b4   :  { %v350_v42 = vmul.f32 %v324_v23, %v1271_v39  ;;  %v1326_v23 = vld [vmem:[#allocation5 + $0x30] sm:$0xff] }
 0x1b5   :  { %v303_v26 = vpop.f32.mrf.mxu1  ;;  %1452 = vst [vmem:[#allocation20_spill] sm:$0xff] %v1326_v23 }
 0x1b6   :  { %v343_v57 = vmul.f32 %v303_v26, %v1292_v54  ;;  %v1335_v26 = vld [vmem:[#allocation5 + $0x48] sm:$0xff] }
 0x1b7   :  { %1455 = vst [vmem:[#allocation23_spill] sm:$0xff] %v1335_v26 }
 0x1bb   :  { %v327_v25 = vpop.f32.mrf.mxu3 }
 0x1bc   :  { %v351_v40 = vmul.f32 %v327_v25, %v1268_v37  ;;  %v1332_v25 = vld [vmem:[#allocation5 + $0x40] sm:$0xff] }
 0x1bd   :  { %v306_v29 = vpop.f32.mrf.mxu1  ;;  %1454 = vst [vmem:[#allocation22_spill] sm:$0xff] %v1332_v25 }
 0x1be   :  { %v344_v55 = vmul.f32 %v306_v29, %v1289_v52  ;;  %v1344_v29 = vld [vmem:[#allocation5 + $0x60] sm:$0xff] }
 0x1bf   :  { %1458 = vst [vmem:[#allocation26_spill] sm:$0xff] %v1344_v29 }
 0x1c3   :  { %v330_v27 = vpop.f32.mrf.mxu3 }
 0x1c4   :  { %v352_v38 = vmul.f32 %v330_v27, %v1265_v34  ;;  %v1338_v27 = vld [vmem:[#allocation5 + $0x50] sm:$0xff] }
 0x1c5   :  { %v309_v35 = vpop.f32.mrf.mxu1  ;;  %1456 = vst [vmem:[#allocation24_spill] sm:$0xff] %v1338_v27 }
 0x1c6   :  { %v345_v53 = vmul.f32 %v309_v35, %v1287_v51  ;;  %v1353_v35 = vld [vmem:[#allocation5 + $0x78] sm:$0xff] }
 0x1c7   :  { %1461 = vst [vmem:[#allocation29_spill] sm:$0xff] %v1353_v35 }
 0x1cb   :  { %v333_v28 = vpop.f32.mrf.mxu3 }
 0x1cc   :  { %v353_v36 = vmul.f32 %v333_v28, %v1262_v31  ;;  %v1341_v28 = vld [vmem:[#allocation5 + $0x58] sm:$0xff] }
 0x1cd   :  { %v312_v47 = vpop.f32.mrf.mxu1  ;;  %1457 = vst [vmem:[#allocation25_spill] sm:$0xff] %v1341_v28 }
 0x1ce   :  { %v346_v50 = vmul.f32 %v312_v47, %v1282_v46 }
 0x1d3   :  { %v336_v32 = vpop.f32.mrf.mxu3 }
 0x1d4   :  { %v354_v33 = vmul.f32 %v336_v32, %v1260_v30  ;;  %v1347_v32 = vld [vmem:[#allocation5 + $0x68] sm:$0xff] }
 0x1d5   :  { %1459 = vst [vmem:[#allocation27_spill] sm:$0xff] %v1347_v32 }
 0x1d6   :  { %355 = vmatpush.msrb.mxu2 %v354_v33  ;;  %v1350_v33 = vld [vmem:[#allocation5 + $0x70] sm:$0xff] }
 0x1d7   :  { %1460 = vst [vmem:[#allocation28_spill] sm:$0xff] %v1350_v33 }
 0x1d8   :  { %356 = vmatpush.msrb.mxu2 %v353_v36 }
 0x1da   :  { %357 = vmatpush.msrb.mxu2 %v352_v38 }
 0x1dc   :  { %358 = vmatpush.msrb.mxu2 %v351_v40 }
 0x1de   :  { %359 = vmatpush.msrb.mxu2 %v350_v42 }
 0x1e0   :  { %360 = vmatpush.msrb.mxu2 %v349_v44 }
 0x1e2   :  { %361 = vmatpush.msrb.mxu2 %v348_v48 }
 0x1e4   :  { %362 = vmatpush.msrb.mxu2 %v347_v49 }
 0x1e6   :  { %363 = vmatpush.msrb.mxu2 %v346_v50 }
 0x1e8   :  { %364 = vmatpush.msrb.mxu2 %v345_v53 }
 0x1ea   :  { %365 = vmatpush.msrb.mxu2 %v344_v55 }
 0x1ec   :  { %366 = vmatpush.msrb.mxu2 %v343_v57 }
 0x1ee   :  { %367 = vmatpush.msrb.mxu2 %v342_v59 }
 0x1f0   :  { %368 = vmatpush.msrb.mxu2 %v341_v61 }
 0x1f2   :  { %369 = vmatpush.msrb.mxu2 %v340_v63 }
 0x1f4   :  { %370 = vmatpush.msrb.mxu2 %v339_v0 }
 0x1f5   :  { %371 = vmatmul.f32.vlgmr.msrb.gmra.mxu2 %v1308_v18 }
 0x1fd   :  { %374 = vmatmul.f32.gmra.mxu2 %v1311_v19 }
 0x205   :  { %377 = vmatmul.f32.gmra.mxu2 %v1314_v21 }
 0x20d   :  { %380 = vmatmul.f32.gmra.mxu2 %v1317_v22 }
 0x215   :  { %383 = vmatmul.f32.gmra.mxu2 %v1320_v20 }
 0x21d   :  { %386 = vmatmul.f32.gmra.mxu2 %v1323_v17 }
 0x225   :  { %389 = vmatmul.f32.gmra.mxu2 %v1326_v23 }
 0x22d   :  { %392 = vmatmul.f32.gmra.mxu2 %v1329_v24 }
 0x235   :  { %395 = vmatmul.f32.gmra.mxu2 %v1332_v25 }
 0x23d   :  { %398 = vmatmul.f32.gmra.mxu2 %v1335_v26 }
 0x245   :  { %401 = vmatmul.f32.gmra.mxu2 %v1338_v27 }
 0x24d   :  { %404 = vmatmul.f32.gmra.mxu2 %v1341_v28 }
 0x255   :  { %407 = vmatmul.f32.gmra.mxu2 %v1344_v29 }
 0x25d   :  { %410 = vmatmul.f32.gmra.mxu2 %v1347_v32 }
 0x265   :  { %413 = vmatmul.f32.gmra.mxu2 %v1350_v33 }
 0x26d   :  { %416 = vmatmul.f32.gmra.mxu2 %v1353_v35 }
 0x278   :  { %v372_v36 = vpop.f32.mrf.mxu2 }
 0x280   :  { %v375_v38 = vpop.f32.mrf.mxu2 }
 0x288   :  { %v378_v40 = vpop.f32.mrf.mxu2 }
 0x290   :  { %v381_v42 = vpop.f32.mrf.mxu2 }
 0x298   :  { %v384_v44 = vpop.f32.mrf.mxu2 }
 0x2a0   :  { %v387_v47 = vpop.f32.mrf.mxu2 }
 0x2a1   :  { %v425_v17 = vmax.f32 %v387_v47, 0.0  ;;  %v585_v47 = vld [vmem:[#allocation11 + $0x18] sm:$0xff] }
 0x2a8   :  { %v390_v48 = vpop.f32.mrf.mxu2 }
 0x2a9   :  { %v426_v23 = vmax.f32 %v390_v48, 0.0  ;;  %v1467_v48 = vld [vmem:[#allocation24_spill] sm:$0xff] }
 0x2b0   :  { %v393_v49 = vpop.f32.mrf.mxu2 }
 0x2b1   :  { %v427_v24 = vmax.f32 %v393_v49, 0.0  ;;  %v584_v49 = vld [vmem:[#allocation11 + $0x10] sm:$0xff] }
 0x2b8   :  { %v396_v50 = vpop.f32.mrf.mxu2 }
 0x2b9   :  { %v428_v25 = vmax.f32 %v396_v50, 0.0  ;;  %v583_v50 = vld [vmem:[#allocation11 + $0x8] sm:$0xff] }
 0x2c0   :  { %v399_v53 = vpop.f32.mrf.mxu2 }
 0x2c1   :  { %v429_v26 = vmax.f32 %v399_v53, 0.0  ;;  %v1468_v53 = vld [vmem:[#allocation25_spill] sm:$0xff] }
 0x2c8   :  { %v402_v55 = vpop.f32.mrf.mxu2 }
 0x2c9   :  { %v430_v27 = vmax.f32 %v402_v55, 0.0  ;;  %v582_v55 = vld [vmem:[#allocation11] sm:$0xff] }
 0x2d0   :  { %v405_v57 = vpop.f32.mrf.mxu2 }
 0x2d1   :  { %v431_v28 = vmax.f32 %v405_v57, 0.0  ;;  %v1469_v57 = vld [vmem:[#allocation26_spill] sm:$0xff] }
 0x2d8   :  { %v408_v59 = vpop.f32.mrf.mxu2 }
 0x2d9   :  { %v432_v29 = vmax.f32 %v408_v59, 0.0  ;;  %v1470_v59 = vld [vmem:[#allocation27_spill] sm:$0xff] }
 0x2e0   :  { %v411_v61 = vpop.f32.mrf.mxu2 }
 0x2e1   :  { %v433_v35 = vmax.f32 %v411_v61, 0.0  ;;  %v1471_v61 = vld [vmem:[#allocation28_spill] sm:$0xff] }
 0x2e8   :  { %v414_v63 = vpop.f32.mrf.mxu2 }
 0x2e9   :  { %v434_v32 = vmax.f32 %v414_v63, 0.0  ;;  %v424_v63 = vmax.f32 %v384_v44, 0.0  ;;  %v586_v44 = vld [vmem:[#allocation11 + $0x20] sm:$0xff] }
 0x2f0   :  { %v417_v0 = vpop.f32.mrf.mxu2 }
 0x2f1   :  { %v435_v33 = vmax.f32 %v417_v0, 0.0  ;;  %v1472_v0 = vld [vmem:[#allocation29_spill] sm:$0xff] }
 0x2f3   :  { %436 = vmatpush.msrb.mxu3 %v435_v33  ;;  %v423_v33 = vmax.f32 %v381_v42, 0.0  ;;  %v1466_v42 = vld [vmem:[#allocation23_spill] sm:$0xff] }
 0x2f5   :  { %437 = vmatpush.msrb.mxu3 %v434_v32  ;;  %v422_v32 = vmax.f32 %v378_v40, 0.0  ;;  %v587_v40 = vld [vmem:[#allocation11 + $0x28] sm:$0xff] }
 0x2f7   :  { %438 = vmatpush.msrb.mxu3 %v433_v35  ;;  %v421_v35 = vmax.f32 %v375_v38, 0.0  ;;  %v588_v38 = vld [vmem:[#allocation11 + $0x30] sm:$0xff] }
 0x2f9   :  { %439 = vmatpush.msrb.mxu3 %v432_v29  ;;  %v420_v29 = vmax.f32 %v372_v36, 0.0  ;;  %v1465_v36 = vld [vmem:[#allocation22_spill] sm:$0xff] }
 0x2fb   :  { %440 = vmatpush.msrb.mxu3 %v431_v28 }
 0x2fd   :  { %441 = vmatpush.msrb.mxu3 %v430_v27 }
 0x2ff   :  { %442 = vmatpush.msrb.mxu3 %v429_v26 }
 0x301   :  { %443 = vmatpush.msrb.mxu3 %v428_v25 }
 0x303   :  { %444 = vmatpush.msrb.mxu3 %v427_v24 }
 0x305   :  { %445 = vmatpush.msrb.mxu3 %v426_v23 }
 0x307   :  { %446 = vmatpush.msrb.mxu3 %v425_v17 }
 0x309   :  { %447 = vmatpush.msrb.mxu3 %v424_v63 }
 0x30b   :  { %448 = vmatpush.msrb.mxu3 %v423_v33 }
 0x30d   :  { %449 = vmatpush.msrb.mxu3 %v422_v32 }
 0x30f   :  { %450 = vmatpush.msrb.mxu3 %v421_v35 }
 0x311   :  { %451 = vmatpush.msrb.mxu3 %v420_v29 }
 0x312   :  { %452 = vmatmul.f32.vlgmr.msrb.gmra.mxu3 %v1214_v2 }
 0x31a   :  { %455 = vmatmul.f32.gmra.mxu3 %v1220_v4 }
 0x322   :  { %458 = vmatmul.f32.gmra.mxu3 %v1226_v6 }
 0x32a   :  { %461 = vmatmul.f32.gmra.mxu3 %v1232_v8 }
 0x332   :  { %464 = vmatmul.f32.gmra.mxu3 %v1238_v10 }
 0x33a   :  { %467 = vmatmul.f32.gmra.mxu3 %v1244_v12 }
 0x342   :  { %470 = vmatmul.f32.gmra.mxu3 %v1250_v14 }
 0x34a   :  { %473 = vmatmul.f32.gmra.mxu3 %v1256_v16 }
 0x352   :  { %476 = vmatmul.f32.gmra.mxu3 %v1212_v1 }
 0x35a   :  { %479 = vmatmul.f32.gmra.mxu3 %v1218_v3 }
 0x362   :  { %482 = vmatmul.f32.gmra.mxu3 %v1224_v5 }
 0x36a   :  { %485 = vmatmul.f32.gmra.mxu3 %v1230_v7 }
 0x372   :  { %488 = vmatmul.f32.gmra.mxu3 %v1236_v9 }
 0x37a   :  { %491 = vmatmul.f32.gmra.mxu3 %v1242_v11 }
 0x382   :  { %494 = vmatmul.f32.gmra.mxu3 %v1248_v13 }
 0x38a   :  { %497 = vmatmul.f32.gmra.mxu3 %v1254_v15 }
 0x395   :  { %v453_v2 = vpop.f32.mrf.mxu3 }
 0x39d   :  { %v456_v4 = vpop.f32.mrf.mxu3 }
 0x3a5   :  { %v459_v6 = vpop.f32.mrf.mxu3 }
 0x3ad   :  { %v462_v8 = vpop.f32.mrf.mxu3 }
 0x3b5   :  { %v465_v10 = vpop.f32.mrf.mxu3 }
 0x3bd   :  { %v468_v1 = vpop.f32.mrf.mxu3 }
 0x3c5   :  { %v471_v12 = vpop.f32.mrf.mxu3 }
 0x3cd   :  { %v474_v3 = vpop.f32.mrf.mxu3 }
 0x3d5   :  { %v477_v14 = vpop.f32.mrf.mxu3 }
 0x3dd   :  { %v480_v5 = vpop.f32.mrf.mxu3 }
 0x3de   :  { %v510_v28 = vmul.f32 %v480_v5, %v1277_v43  ;;  %v503_v43 = vmul.f32 %v459_v6, %v1298_v58  ;;  %v594_v58 = vld [vmem:[#allocation11 + $0x60] sm:$0xff] }
 0x3e5   :  { %v483_v16 = vpop.f32.mrf.mxu3 }
 0x3e6   :  { %v511_v27 = vmul.f32 %v483_v16, %v1274_v41  ;;  %v504_v41 = vmul.f32 %v462_v8, %v1295_v56  ;;  %v1462_v56 = vld [vmem:[#allocation19_spill] sm:$0xff] }
 0x3ed   :  { %v486_v7 = vpop.f32.mrf.mxu3 }
 0x3ee   :  { %v512_v26 = vmul.f32 %v486_v7, %v1271_v39  ;;  %v505_v39 = vmul.f32 %v465_v10, %v1292_v54  ;;  %v595_v54 = vld [vmem:[#allocation11 + $0x68] sm:$0xff]  ;;  %v1407_v7 = vld [vmem:[%s1438_s7] ss:$0 sm:$0xff]  ;;  %s1127_s7 = smov [#allocation13]  }
 0x3ef   :  { %s880_s12 = sshll.u32 %s1127_s7, 4  ;;  %s881_s12 = int_to_ptr.vmem [resolvable:$true] %s880_s12 }
 0x3f5   :  { %v489_v17 = vpop.f32.mrf.mxu3 }
 0x3f6   :  { %v513_v25 = vmul.f32 %v489_v17, %v1268_v37  ;;  %v506_v37 = vmul.f32 %v468_v1, %v1289_v52  ;;  %v596_v52 = vld [vmem:[#allocation11 + $0x70] sm:$0xff] }
 0x3fd   :  { %v492_v9 = vpop.f32.mrf.mxu3 }
 0x3fe   :  { %v514_v24 = vmul.f32 %v492_v9, %v1265_v34  ;;  %v507_v34 = vmul.f32 %v471_v12, %v1287_v51  ;;  %v597_v51 = vld [vmem:[#allocation11 + $0x78] sm:$0xff] }
 0x3ff   :  { %598 = vmatpush.msrb.mxu1 %v597_v51 }
 0x401   :  { %599 = vmatpush.msrb.mxu1 %v596_v52 }
 0x403   :  { %600 = vmatpush.msrb.mxu1 %v595_v54 }
 0x405   :  { %v495_v23 = vpop.f32.mrf.mxu3  ;;  %601 = vmatpush.msrb.mxu1 %v594_v58 }
 0x406   :  { %v515_v15 = vmul.f32 %v495_v23, %v1262_v31  ;;  %v508_v31 = vmul.f32 %v474_v3, %v1282_v46  ;;  %v501_v46 = vmul.f32 %v453_v2, %v1304_v62  ;;  %v1463_v62 = vld [vmem:[#allocation20_spill] sm:$0xff] }
 0x40d   :  { %v498_v11 = vpop.f32.mrf.mxu3 }
 0x40e   :  { %v516_v13 = vmul.f32 %v498_v11, %v1260_v30  ;;  %v509_v30 = vmul.f32 %v477_v14, %v1280_v45  ;;  %v502_v45 = vmul.f32 %v456_v4, %v1301_v60  ;;  %v593_v60 = vld [vmem:[#allocation11 + $0x58] sm:$0xff] }
 0x40f   :  { %602 = vmatpush.msrb.mxu1 %v593_v60 }
 0x410   :  { %517 = vmatpush.msrb.mxu0 %v516_v13 }
 0x412   :  { %518 = vmatpush.msrb.mxu0 %v515_v15 }
 0x414   :  { %519 = vmatpush.msrb.mxu0 %v514_v24 }
 0x416   :  { %520 = vmatpush.msrb.mxu0 %v513_v25 }
 0x418   :  { %521 = vmatpush.msrb.mxu0 %v512_v26 }
 0x41a   :  { %522 = vmatpush.msrb.mxu0 %v511_v27 }
 0x41c   :  { %523 = vmatpush.msrb.mxu0 %v510_v28 }
 0x41e   :  { %524 = vmatpush.msrb.mxu0 %v509_v30 }
 0x420   :  { %525 = vmatpush.msrb.mxu0 %v508_v31 }
 0x422   :  { %526 = vmatpush.msrb.mxu0 %v507_v34 }
 0x424   :  { %527 = vmatpush.msrb.mxu0 %v506_v37 }
 0x426   :  { %528 = vmatpush.msrb.mxu0 %v505_v39 }
 0x428   :  { %529 = vmatpush.msrb.mxu0 %v504_v41 }
 0x42a   :  { %530 = vmatpush.msrb.mxu0 %v503_v43 }
 0x42c   :  { %531 = vmatpush.msrb.mxu0 %v502_v45 }
 0x42e   :  { %532 = vmatpush.msrb.mxu0 %v501_v46 }
 0x42f   :  { %533 = vmatmul.f32.vlgmr.msrb.gmra.mxu0 %v1308_v18  ;;  %v592_v18 = vld [vmem:[#allocation11 + $0x50] sm:$0xff] }
 0x430   :  { %603 = vmatpush.msrb.mxu1 %v592_v18 }
 0x437   :  { %536 = vmatmul.f32.gmra.mxu0 %v1311_v19  ;;  %v591_v19 = vld [vmem:[#allocation11 + $0x48] sm:$0xff] }
 0x438   :  { %604 = vmatpush.msrb.mxu1 %v591_v19 }
 0x43f   :  { %539 = vmatmul.f32.gmra.mxu0 %v1314_v21  ;;  %v1464_v21 = vld [vmem:[#allocation21_spill] sm:$0xff] }
 0x447   :  { %542 = vmatmul.f32.gmra.mxu0 %v1317_v22  ;;  %v590_v22 = vld [vmem:[#allocation11 + $0x40] sm:$0xff] }
 0x448   :  { %605 = vmatpush.msrb.mxu1 %v590_v22 }
 0x44f   :  { %545 = vmatmul.f32.gmra.mxu0 %v1320_v20  ;;  %v589_v20 = vld [vmem:[#allocation11 + $0x38] sm:$0xff] }
 0x450   :  { %606 = vmatpush.msrb.mxu1 %v589_v20 }
 0x452   :  { %607 = vmatpush.msrb.mxu1 %v588_v38 }
 0x454   :  { %608 = vmatpush.msrb.mxu1 %v587_v40 }
 0x456   :  { %609 = vmatpush.msrb.mxu1 %v586_v44 }
 0x457   :  { %548 = vmatmul.f32.gmra.mxu0 %v1462_v56 }
 0x458   :  { %610 = vmatpush.msrb.mxu1 %v585_v47 }
 0x45a   :  { %611 = vmatpush.msrb.mxu1 %v584_v49 }
 0x45c   :  { %612 = vmatpush.msrb.mxu1 %v583_v50 }
 0x45e   :  { %613 = vmatpush.msrb.mxu1 %v582_v55 }
 0x45f   :  { %551 = vmatmul.f32.gmra.mxu0 %v1463_v62 }
 0x467   :  { %554 = vmatmul.f32.gmra.mxu0 %v1464_v21 }
 0x46f   :  { %557 = vmatmul.f32.gmra.mxu0 %v1465_v36 }
 0x477   :  { %560 = vmatmul.f32.gmra.mxu0 %v1466_v42 }
 0x47f   :  { %563 = vmatmul.f32.gmra.mxu0 %v1467_v48 }
 0x487   :  { %566 = vmatmul.f32.gmra.mxu0 %v1468_v53 }
 0x48f   :  { %569 = vmatmul.f32.gmra.mxu0 %v1469_v57 }
 0x497   :  { %572 = vmatmul.f32.gmra.mxu0 %v1470_v59 }
 0x49f   :  { %575 = vmatmul.f32.gmra.mxu0 %v1471_v61 }
 0x4a7   :  { %578 = vmatmul.f32.gmra.mxu0 %v1472_v0 }
 0x4ac   :  { %v534_v63 = vpop.f32.mrf.mxu0 }
 0x4ad   :  { %614 = vmatmul.f32.vlgmr.msrb.gmra.mxu1 %v534_v63 }
 0x4b4   :  { %v537_v33 = vpop.f32.mrf.mxu0 }
 0x4b5   :  { %617 = vmatmul.f32.gmra.mxu1 %v537_v33 }
 0x4bc   :  { %v540_v32 = vpop.f32.mrf.mxu0 }
 0x4bd   :  { %620 = vmatmul.f32.gmra.mxu1 %v540_v32 }
 0x4c4   :  { %v543_v35 = vpop.f32.mrf.mxu0 }
 0x4c5   :  { %623 = vmatmul.f32.gmra.mxu1 %v543_v35 }
 0x4cc   :  { %v546_v29 = vpop.f32.mrf.mxu0 }
 0x4cd   :  { %626 = vmatmul.f32.gmra.mxu1 %v546_v29 }
 0x4d4   :  { %v549_v2 = vpop.f32.mrf.mxu0 }
 0x4d5   :  { %629 = vmatmul.f32.gmra.mxu1 %v549_v2 }
 0x4dc   :  { %v552_v4 = vpop.f32.mrf.mxu0 }
 0x4dd   :  { %632 = vmatmul.f32.gmra.mxu1 %v552_v4 }
 0x4e4   :  { %v555_v6 = vpop.f32.mrf.mxu0 }
 0x4e5   :  { %635 = vmatmul.f32.gmra.mxu1 %v555_v6 }
 0x4ec   :  { %v558_v8 = vpop.f32.mrf.mxu0 }
 0x4ed   :  { %638 = vmatmul.f32.gmra.mxu1 %v558_v8 }
 0x4f4   :  { %v561_v10 = vpop.f32.mrf.mxu0 }
 0x4f5   :  { %641 = vmatmul.f32.gmra.mxu1 %v561_v10 }
 0x4fc   :  { %v564_v1 = vpop.f32.mrf.mxu0 }
 0x4fd   :  { %644 = vmatmul.f32.gmra.mxu1 %v564_v1 }
 0x504   :  { %v567_v12 = vpop.f32.mrf.mxu0 }
 0x505   :  { %647 = vmatmul.f32.gmra.mxu1 %v567_v12 }
 0x50c   :  { %v570_v3 = vpop.f32.mrf.mxu0 }
 0x50d   :  { %650 = vmatmul.f32.gmra.mxu1 %v570_v3 }
 0x514   :  { %v573_v14 = vpop.f32.mrf.mxu0 }
 0x515   :  { %653 = vmatmul.f32.gmra.mxu1 %v573_v14 }
 0x51c   :  { %v576_v5 = vpop.f32.mrf.mxu0 }
 0x51d   :  { %656 = vmatmul.f32.gmra.mxu1 %v576_v5 }
 0x524   :  { %v579_v16 = vpop.f32.mrf.mxu0 }
 0x525   :  { %659 = vmatmul.f32.gmra.mxu1 %v579_v16 }
 0x52a   :  { %v615_v17 = vpop.f32.mrf.mxu1 }
 0x52b   :  { %v670_v9 = vadd.f32 %v1407_v7, %v615_v17 }
 0x52d   :  { %v686_v23 = vmax.f32 %v670_v9, 0.0 }
 0x52f   :  { %702 = vst [vmem:[#allocation13] sm:$0xff] %v686_v23 }
 0x532   :  { %v618_v11 = vpop.f32.mrf.mxu1 }
 0x533   :  { %v671_v13 = vadd.f32 %v1407_v7, %v618_v11 }
 0x535   :  { %v687_v15 = vmax.f32 %v671_v13, 0.0 }
 0x537   :  { %703 = vst [vmem:[#allocation13 + $0x8] sm:$0xff] %v687_v15 }
 0x53a   :  { %v621_v24 = vpop.f32.mrf.mxu1 }
 0x53b   :  { %v672_v25 = vadd.f32 %v1407_v7, %v621_v24 }
 0x53d   :  { %v688_v26 = vmax.f32 %v672_v25, 0.0 }
 0x53f   :  { %704 = vst [vmem:[#allocation13 + $0x10] sm:$0xff] %v688_v26 }
 0x542   :  { %v624_v27 = vpop.f32.mrf.mxu1 }
 0x543   :  { %v673_v28 = vadd.f32 %v1407_v7, %v624_v27 }
 0x545   :  { %v689_v30 = vmax.f32 %v673_v28, 0.0 }
 0x547   :  { %705 = vst [vmem:[#allocation13 + $0x18] sm:$0xff] %v689_v30 }
 0x54a   :  { %v627_v31 = vpop.f32.mrf.mxu1 }
 0x54b   :  { %v674_v34 = vadd.f32 %v1407_v7, %v627_v31 }
 0x54d   :  { %v690_v37 = vmax.f32 %v674_v34, 0.0 }
 0x54f   :  { %706 = vst [vmem:[#allocation13 + $0x20] sm:$0xff] %v690_v37 }
 0x552   :  { %v630_v39 = vpop.f32.mrf.mxu1 }
 0x553   :  { %v675_v41 = vadd.f32 %v1407_v7, %v630_v39 }
 0x555   :  { %v691_v43 = vmax.f32 %v675_v41, 0.0 }
 0x557   :  { %707 = vst [vmem:[#allocation13 + $0x28] sm:$0xff] %v691_v43 }
 0x55a   :  { %v633_v45 = vpop.f32.mrf.mxu1 }
 0x55b   :  { %v676_v46 = vadd.f32 %v1407_v7, %v633_v45 }
 0x55d   :  { %v692_v51 = vmax.f32 %v676_v46, 0.0 }
 0x55f   :  { %708 = vst [vmem:[#allocation13 + $0x30] sm:$0xff] %v692_v51 }
 0x562   :  { %v636_v52 = vpop.f32.mrf.mxu1 }
 0x563   :  { %v677_v54 = vadd.f32 %v1407_v7, %v636_v52 }
 0x565   :  { %v693_v56 = vmax.f32 %v677_v54, 0.0 }
 0x567   :  { %709 = vst [vmem:[#allocation13 + $0x38] sm:$0xff] %v693_v56 }
 0x56a   :  { %v639_v58 = vpop.f32.mrf.mxu1 }
 0x56b   :  { %v678_v60 = vadd.f32 %v1407_v7, %v639_v58 }
 0x56d   :  { %v694_v62 = vmax.f32 %v678_v60, 0.0 }
 0x56f   :  { %710 = vst [vmem:[#allocation13 + $0x40] sm:$0xff] %v694_v62 }
 0x572   :  { %v642_v18 = vpop.f32.mrf.mxu1 }
 0x573   :  { %v679_v19 = vadd.f32 %v1407_v7, %v642_v18 }
 0x575   :  { %v695_v21 = vmax.f32 %v679_v19, 0.0 }
 0x577   :  { %711 = vst [vmem:[#allocation13 + $0x48] sm:$0xff] %v695_v21 }
 0x57a   :  { %v645_v22 = vpop.f32.mrf.mxu1 }
 0x57b   :  { %v680_v20 = vadd.f32 %v1407_v7, %v645_v22 }
 0x57d   :  { %v696_v36 = vmax.f32 %v680_v20, 0.0 }
 0x57f   :  { %712 = vst [vmem:[#allocation13 + $0x50] sm:$0xff] %v696_v36 }
 0x582   :  { %v648_v38 = vpop.f32.mrf.mxu1 }
 0x583   :  { %v681_v40 = vadd.f32 %v1407_v7, %v648_v38 }
 0x585   :  { %v697_v42 = vmax.f32 %v681_v40, 0.0 }
 0x587   :  { %713 = vst [vmem:[#allocation13 + $0x58] sm:$0xff] %v697_v42 }
 0x58a   :  { %v651_v44 = vpop.f32.mrf.mxu1 }
 0x58b   :  { %v682_v47 = vadd.f32 %v1407_v7, %v651_v44 }
 0x58d   :  { %v698_v48 = vmax.f32 %v682_v47, 0.0 }
 0x58f   :  { %714 = vst [vmem:[#allocation13 + $0x60] sm:$0xff] %v698_v48 }
 0x592   :  { %v654_v49 = vpop.f32.mrf.mxu1 }
 0x593   :  { %v683_v50 = vadd.f32 %v1407_v7, %v654_v49 }
 0x595   :  { %v699_v53 = vmax.f32 %v683_v50, 0.0 }
 0x597   :  { %715 = vst [vmem:[#allocation13 + $0x68] sm:$0xff] %v699_v53 }
 0x59a   :  { %v657_v55 = vpop.f32.mrf.mxu1 }
 0x59b   :  { %v684_v57 = vadd.f32 %v1407_v7, %v657_v55 }
 0x59d   :  { %v700_v59 = vmax.f32 %v684_v57, 0.0 }
 0x59f   :  { %716 = vst [vmem:[#allocation13 + $0x70] sm:$0xff] %v700_v59 }
 0x5a2   :  { %v660_v61 = vpop.f32.mrf.mxu1 }
 0x5a3   :  { %v685_v0 = vadd.f32 %v1407_v7, %v660_v61 }
 0x5a5   :  { %v701_v63 = vmax.f32 %v685_v0, 0.0 }
 0x5a7   :  { %717 = vst [vmem:[#allocation13 + $0x78] sm:$0xff] %v701_v63 }
 0x5a8   :  { %888 = dma.vmem_to_hbm [thread:$0]  %s881_s12, 2048, %s883_s17, [#allocation4], %s1120_s13, %s1120_s13, %s1121_s14  }
 0x5a9   :  { %1117 = dma.done.wait [#allocation4], 2048  }
 0x5aa   :  { %1118 = vsyncadd [#allocation4], 4294965248 }
 0x5ab   :  { %893 = vsyncpa [#allocation3], 1 }
 0x5ac   :  { %894 = vsyncpa [#allocation6], 1 }
 0x5ad   :  { %895 = vsyncpa [#allocation9], 1 }
 0x5ae   :  { %896 = vsyncpa [#allocation12], 1 }
 0x5af   :  { %897 = vsyncpa [#allocation4], 1 }

</bundles_post_ra>
